<compile_context>
chip_gen: v7x
topology: tpu7x:2x2x1
jax: 0.10.0
libtpu: 0.0.40
codegen_flags: <defaults>
</compile_context>

<pallas_src>
import jax
import jax.numpy as jnp
from jax import lax
from jax.experimental import pallas as pl
from jax.experimental.pallas import tpu as pltpu  # noqa: F401  (TPU backend)
import numpy as np

# ----------------------------- model config ---------------------------------
NUM_EMBEDDINGS = 50     # vocab size
PADDING_IDX    = 0
EMBEDDING_DIM  = 16
HIDDEN_DIM     = 32
NUM_LAYERS     = 2
DROPOUT        = 0.5    # identity in eval mode
BIDIRECTIONAL  = False  # module accepts it but its GRU is unidirectional

BATCH   = 2
SEQ_LEN = 8
BATCH_P = 8             # batch padded to the sublane quantum


# ----------------------------- fused Pallas kernel ---------------------------
def make_fused_rnn_kernel(num_layers, seq_len, batch_p, hidden_dim, vocab):
    """Embedding gather + multi-layer GRU (packed-seq, wavefronted) + fc."""
    T, Bp, H, V, L = seq_len, batch_p, hidden_dim, vocab, num_layers
    f32 = jnp.float32

    def kernel(*refs):
        ids_ref, len_ref, emb_ref = refs[0], refs[1], refs[2]
        layer_refs = refs[3:3 + 4 * L]
        wfc_ref = refs[3 + 4 * L]
        bfc_ref = refs[4 + 4 * L]
        out_ref = refs[5 + 4 * L]

        # ---- fused embedding lookup: one-hot matmul (MXU) instead of gather.
        ids = ids_ref[...]                                        # (T*Bp, 1)
        vocab_iota = lax.broadcasted_iota(jnp.int32, (T * Bp, V), 1)
        onehot = (ids == vocab_iota).astype(f32)                  # (T*Bp, V)
        x0 = jnp.dot(onehot, emb_ref[...], preferred_element_type=f32)  # (T*Bp, E)
        # TODO(synk): dropout is eval-mode identity (no PyTorch-matching RNG).

        # ---- packed-sequence masks, layer-invariant, hoisted (T of them).
        lengths = len_ref[...]                                    # (Bp, 1) int32
        masks = [jnp.broadcast_to(t < lengths, (Bp, H)) for t in range(T)]

        # ---- per-layer weights / hoisted broadcasts.
        wih = [layer_refs[4 * l + 0][...] for l in range(L)]      # (D_in, 3H)
        whh = [layer_refs[4 * l + 1][...] for l in range(L)]      # (H, 3H)
        bgi = [layer_refs[4 * l + 2][...] for l in range(L)]      # (1, 3H)  b_ih + b_hr/b_hz
        bhn = [jnp.broadcast_to(layer_refs[4 * l + 3][...], (Bp, H))
               for l in range(L)]                                 # (Bp, H)  b_hn
        bgi_b = [jnp.broadcast_to(bgi[l], (Bp, 3 * H)) for l in range(L)]

        # ---- layer-0 input projection hoisted over the whole sequence.
        gi0 = jnp.dot(x0, wih[0], preferred_element_type=f32) + bgi[0]  # (T*Bp, 3H)

        def gru_cell(gi_t, h_t, l):
            # gi_t already contains b_ih (+ folded b_hr, b_hz).
            gh = jnp.dot(h_t, whh[l], preferred_element_type=f32)       # (Bp, 3H)
            r = jax.nn.sigmoid(gi_t[:, 0 * H:1 * H] + gh[:, 0 * H:1 * H])
            z = jax.nn.sigmoid(gi_t[:, 1 * H:2 * H] + gh[:, 1 * H:2 * H])
            n = jnp.tanh(gi_t[:, 2 * H:3 * H] + r * (gh[:, 2 * H:3 * H] + bhn[l]))
            return (1.0 - z) * n + z * h_t

        # ---- wavefront: at tick, layer l computes timestep (tick - l).
        h = [jnp.zeros((Bp, H), f32) for _ in range(L)]
        for tick in range(T + L - 1):                  # static unroll (9 ticks)
            h_prev = list(h)                           # snapshot of last tick
            for l in range(L):
                t = tick - l
                if 0 <= t < T:
                    if l == 0:
                        gi_t = gi0[t * Bp:(t + 1) * Bp, :]   # sublane-aligned
                    else:
                        gi_t = (jnp.dot(h_prev[l - 1], wih[l],
                                        preferred_element_type=f32) + bgi_b[l])
                    h_new = gru_cell(gi_t, h_prev[l], l)
                    # packed-seq semantics: freeze once t >= length[b]
                    h[l] = jnp.where(masks[t], h_new, h_prev[l])

        # ---- fc on the last layer's final hidden; 128-lane-dense store.
        out_ref[...] = (jnp.dot(h[L - 1], wfc_ref[...],
                                preferred_element_type=f32) + bfc_ref[...])

    return kernel


# ----------------------------- wrapper ---------------------------------------
def rnn_forward(params, text, text_lengths):
    """Pallas implementation of RNN.forward (eval mode)."""
    B, T = text.shape
    H = HIDDEN_DIM
    Bp = BATCH_P

    # Tiny int32 reshuffles only; all float-activation work is in the kernel.
    ids = jnp.full((Bp, T), PADDING_IDX, jnp.int32).at[:B].set(text.astype(jnp.int32))
    ids_tm = ids.T.reshape(T * Bp, 1)                               # time-major
    lens = jnp.zeros((Bp, 1), jnp.int32).at[:B, 0].set(text_lengths.astype(jnp.int32))

    args = [ids_tm, lens, params["embedding"].astype(jnp.float32)]
    for l in range(NUM_LAYERS):
        bih, bhh = params[f"bih{l}"], params[f"bhh{l}"]
        # fold b_hr, b_hz into the (hoistable) input-projection bias;
        # keep b_hn separate — it lives inside the r*(.) term.
        bgi = bih + bhh.at[:, 2 * H:].set(0.0)                      # (1, 3H)
        bhn = bhh[:, 2 * H:]                                        # (1, H)
        args += [params[f"wih{l}"], params[f"whh{l}"], bgi, bhn]

    # pad fc to 128 output lanes for a lane-dense store
    wfc = jnp.zeros((H, 128), jnp.float32).at[:, :1].set(params["w_fc"])
    bfc = jnp.zeros((1, 128), jnp.float32).at[:, :1].set(params["b_fc"])
    args += [wfc, bfc]

    out = pl.pallas_call(
        make_fused_rnn_kernel(NUM_LAYERS, T, Bp, H, NUM_EMBEDDINGS),
        out_shape=jax.ShapeDtypeStruct((Bp, 128), jnp.float32),
    )(*args)
    return out[:B, 0]


# ----------------------------- pure-JAX reference ----------------------------
def gru_layer_ref(x_tbd, lengths, wih, whh, bih, bhh):
    T, B, _ = x_tbd.shape
    H = whh.shape[0]

    def step(h, inp):
        xt, t = inp
        gi = xt @ wih + bih
        gh = h @ whh + bhh
        i_r, i_z, i_n = jnp.split(gi, 3, axis=-1)
        h_r, h_z, h_n = jnp.split(gh, 3, axis=-1)
        r = jax.nn.sigmoid(i_r + h_r)
        z = jax.nn.sigmoid(i_z + h_z)
        n = jnp.tanh(i_n + r * h_n)
        h_new = (1.0 - z) * n + z * h
        mask = (t < lengths)[:, None].astype(jnp.float32)
        h_out = mask * h_new + (1.0 - mask) * h
        return h_out, h_out

    h0 = jnp.zeros((B, H), jnp.float32)
    h_fin, outs = lax.scan(step, h0, (x_tbd, jnp.arange(T)))
    return outs, h_fin


def rnn_forward_ref(params, text, text_lengths):
    emb = params["embedding"][text]
    x = jnp.transpose(emb, (1, 0, 2)).astype(jnp.float32)
    inp = x
    h_fin = None
    for l in range(NUM_LAYERS):
        inp, h_fin = gru_layer_ref(
            inp, text_lengths.astype(jnp.int32),
            params[f"wih{l}"], params[f"whh{l}"],
            params[f"bih{l}"], params[f"bhh{l}"])
    logits = h_fin @ params["w_fc"] + params["b_fc"]
    return jnp.squeeze(logits, axis=-1)


# ----------------------------- parameter init --------------------------------
def init_params(key):
    params = {}
    k = iter(jax.random.split(key, 4 + 4 * NUM_LAYERS))

    emb = jax.random.normal(next(k), (NUM_EMBEDDINGS, EMBEDDING_DIM), jnp.float32)
    emb = emb.at[PADDING_IDX].set(0.0)       # nn.Embedding zeros the padding row
    params["embedding"] = emb

    bound = 1.0 / np.sqrt(HIDDEN_DIM)
    for l in range(NUM_LAYERS):
        d_in = EMBEDDING_DIM if l == 0 else HIDDEN_DIM
        # stored pre-transposed: (d_in, 3H) / (H, 3H); gate order r, z, n
        params[f"wih{l}"] = jax.random.uniform(next(k), (d_in, 3 * HIDDEN_DIM),
                                               jnp.float32, -bound, bound)
        params[f"whh{l}"] = jax.random.uniform(next(k), (HIDDEN_DIM, 3 * HIDDEN_DIM),
                                               jnp.float32, -bound, bound)
        params[f"bih{l}"] = jax.random.uniform(next(k), (1, 3 * HIDDEN_DIM),
                                               jnp.float32, -bound, bound)
        params[f"bhh{l}"] = jax.random.uniform(next(k), (1, 3 * HIDDEN_DIM),
                                               jnp.float32, -bound, bound)

    fc_bound = 1.0 / np.sqrt(HIDDEN_DIM)
    params["w_fc"] = jax.random.uniform(next(k), (HIDDEN_DIM, 1),
                                        jnp.float32, -fc_bound, fc_bound)
    params["b_fc"] = jax.random.uniform(next(k), (1, 1),
                                        jnp.float32, -fc_bound, fc_bound)
    return params


# ----------------------------- main ------------------------------------------
if __name__ == "__main__":
    key = jax.random.PRNGKey(0)
    pkey, tkey = jax.random.split(key)
    params = init_params(pkey)

    # text: (B, T) token ids, padded with PADDING_IDX; lengths sorted descending
    # (pack_padded_sequence default enforce_sorted=True).
    text_lengths = jnp.array([SEQ_LEN, 5], dtype=jnp.int32)          # (B,)
    text = jax.random.randint(tkey, (BATCH, SEQ_LEN), 1, NUM_EMBEDDINGS,
                              dtype=jnp.int32)
    pos = jnp.arange(SEQ_LEN)[None, :]
    text = jnp.where(pos < text_lengths[:, None], text, PADDING_IDX)

    fwd = jax.jit(rnn_forward)
    out = jax.block_until_ready(fwd(params, text, text_lengths))
    ref = jax.block_until_ready(rnn_forward_ref(params, text, text_lengths))

    assert out.shape == (BATCH,), out.shape
    np.testing.assert_allclose(np.asarray(out), np.asarray(ref),
                               rtol=1e-5, atol=1e-5)
    print("KERNEL_OK")
</pallas_src>

<mosaic_0001>
module attributes {stable_mosaic.version = 11 : i64} {
  func.func @kernel(%arg0: memref<64x1xi32, #tpu.memory_space<vmem>>, %arg1: memref<8x1xi32, #tpu.memory_space<vmem>>, %arg2: memref<50x16xf32, #tpu.memory_space<vmem>>, %arg3: memref<16x96xf32, #tpu.memory_space<vmem>>, %arg4: memref<32x96xf32, #tpu.memory_space<vmem>>, %arg5: memref<1x96xf32, #tpu.memory_space<vmem>>, %arg6: memref<1x32xf32, #tpu.memory_space<vmem>>, %arg7: memref<32x96xf32, #tpu.memory_space<vmem>>, %arg8: memref<32x96xf32, #tpu.memory_space<vmem>>, %arg9: memref<1x96xf32, #tpu.memory_space<vmem>>, %arg10: memref<1x32xf32, #tpu.memory_space<vmem>>, %arg11: memref<32x128xf32, #tpu.memory_space<vmem>>, %arg12: memref<1x128xf32, #tpu.memory_space<vmem>>, %arg13: memref<8x128xf32, #tpu.memory_space<vmem>>) attributes {dimension_semantics = [], scalar_prefetch = 0 : i64, scratch_operands = 0 : i64, tpu.core_type = #tpu.core_type<tc>} {
    %c0 = arith.constant 0 : index
    %c0_0 = arith.constant 0 : index
    %0 = vector.load %arg0[%c0, %c0_0] : memref<64x1xi32, #tpu.memory_space<vmem>>, vector<64x1xi32>
    %1 = tpu.iota {dimensions = array<i32: 1>} : vector<64x50xi32>
    %2 = vector.broadcast %0 : vector<64x1xi32> to vector<64x50xi32>
    %3 = arith.cmpi eq, %2, %1 : vector<64x50xi32>
    %4 = arith.extui %3 : vector<64x50xi1> to vector<64x50xi32>
    %5 = arith.sitofp %4 : vector<64x50xi32> to vector<64x50xf32>
    %c0_1 = arith.constant 0 : index
    %c0_2 = arith.constant 0 : index
    %6 = vector.load %arg2[%c0_1, %c0_2] : memref<50x16xf32, #tpu.memory_space<vmem>>, vector<50x16xf32>
    %cst = arith.constant dense<0.000000e+00> : vector<64x16xf32>
    %7 = tpu.matmul %5, %6, %cst {dimension_numbers = #tpu.dot_dimension_numbers<[1], [0], [0], [1], [0, 0, 1, 1], [], []>} : vector<64x50xf32>, vector<50x16xf32>, vector<64x16xf32> -> vector<64x16xf32>
    %c0_3 = arith.constant 0 : index
    %c0_4 = arith.constant 0 : index
    %8 = vector.load %arg1[%c0_3, %c0_4] : memref<8x1xi32, #tpu.memory_space<vmem>>, vector<8x1xi32>
    %c0_i32 = arith.constant 0 : i32
    %9 = vector.broadcast %c0_i32 : i32 to vector<8x1xi32>
    %10 = arith.cmpi sgt, %8, %9 : vector<8x1xi32>
    %11 = vector.shape_cast %10 : vector<8x1xi1> to vector<8x1xi1>
    %12 = vector.broadcast %11 : vector<8x1xi1> to vector<8x32xi1>
    %c1_i32 = arith.constant 1 : i32
    %13 = vector.broadcast %c1_i32 : i32 to vector<8x1xi32>
    %14 = arith.cmpi sgt, %8, %13 : vector<8x1xi32>
    %15 = vector.shape_cast %14 : vector<8x1xi1> to vector<8x1xi1>
    %16 = vector.broadcast %15 : vector<8x1xi1> to vector<8x32xi1>
    %c2_i32 = arith.constant 2 : i32
    %17 = vector.broadcast %c2_i32 : i32 to vector<8x1xi32>
    %18 = arith.cmpi sgt, %8, %17 : vector<8x1xi32>
    %19 = vector.shape_cast %18 : vector<8x1xi1> to vector<8x1xi1>
    %20 = vector.broadcast %19 : vector<8x1xi1> to vector<8x32xi1>
    %c3_i32 = arith.constant 3 : i32
    %21 = vector.broadcast %c3_i32 : i32 to vector<8x1xi32>
    %22 = arith.cmpi sgt, %8, %21 : vector<8x1xi32>
    %23 = vector.shape_cast %22 : vector<8x1xi1> to vector<8x1xi1>
    %24 = vector.broadcast %23 : vector<8x1xi1> to vector<8x32xi1>
    %c4_i32 = arith.constant 4 : i32
    %25 = vector.broadcast %c4_i32 : i32 to vector<8x1xi32>
    %26 = arith.cmpi sgt, %8, %25 : vector<8x1xi32>
    %27 = vector.shape_cast %26 : vector<8x1xi1> to vector<8x1xi1>
    %28 = vector.broadcast %27 : vector<8x1xi1> to vector<8x32xi1>
    %c5_i32 = arith.constant 5 : i32
    %29 = vector.broadcast %c5_i32 : i32 to vector<8x1xi32>
    %30 = arith.cmpi sgt, %8, %29 : vector<8x1xi32>
    %31 = vector.shape_cast %30 : vector<8x1xi1> to vector<8x1xi1>
    %32 = vector.broadcast %31 : vector<8x1xi1> to vector<8x32xi1>
    %c6_i32 = arith.constant 6 : i32
    %33 = vector.broadcast %c6_i32 : i32 to vector<8x1xi32>
    %34 = arith.cmpi sgt, %8, %33 : vector<8x1xi32>
    %35 = vector.shape_cast %34 : vector<8x1xi1> to vector<8x1xi1>
    %36 = vector.broadcast %35 : vector<8x1xi1> to vector<8x32xi1>
    %c7_i32 = arith.constant 7 : i32
    %37 = vector.broadcast %c7_i32 : i32 to vector<8x1xi32>
    %38 = arith.cmpi sgt, %8, %37 : vector<8x1xi32>
    %39 = vector.shape_cast %38 : vector<8x1xi1> to vector<8x1xi1>
    %40 = vector.broadcast %39 : vector<8x1xi1> to vector<8x32xi1>
    %c0_5 = arith.constant 0 : index
    %c0_6 = arith.constant 0 : index
    %41 = vector.load %arg3[%c0_5, %c0_6] : memref<16x96xf32, #tpu.memory_space<vmem>>, vector<16x96xf32>
    %c0_7 = arith.constant 0 : index
    %c0_8 = arith.constant 0 : index
    %42 = vector.load %arg7[%c0_7, %c0_8] : memref<32x96xf32, #tpu.memory_space<vmem>>, vector<32x96xf32>
    %c0_9 = arith.constant 0 : index
    %c0_10 = arith.constant 0 : index
    %43 = vector.load %arg4[%c0_9, %c0_10] : memref<32x96xf32, #tpu.memory_space<vmem>>, vector<32x96xf32>
    %c0_11 = arith.constant 0 : index
    %c0_12 = arith.constant 0 : index
    %44 = vector.load %arg8[%c0_11, %c0_12] : memref<32x96xf32, #tpu.memory_space<vmem>>, vector<32x96xf32>
    %c0_13 = arith.constant 0 : index
    %c0_14 = arith.constant 0 : index
    %45 = vector.load %arg5[%c0_13, %c0_14] : memref<1x96xf32, #tpu.memory_space<vmem>>, vector<1x96xf32>
    %c0_15 = arith.constant 0 : index
    %c0_16 = arith.constant 0 : index
    %46 = vector.load %arg9[%c0_15, %c0_16] : memref<1x96xf32, #tpu.memory_space<vmem>>, vector<1x96xf32>
    %c0_17 = arith.constant 0 : index
    %c0_18 = arith.constant 0 : index
    %47 = vector.load %arg6[%c0_17, %c0_18] : memref<1x32xf32, #tpu.memory_space<vmem>>, vector<1x32xf32>
    %48 = vector.shape_cast %47 : vector<1x32xf32> to vector<1x32xf32>
    %49 = vector.broadcast %48 : vector<1x32xf32> to vector<8x32xf32>
    %c0_19 = arith.constant 0 : index
    %c0_20 = arith.constant 0 : index
    %50 = vector.load %arg10[%c0_19, %c0_20] : memref<1x32xf32, #tpu.memory_space<vmem>>, vector<1x32xf32>
    %51 = vector.shape_cast %50 : vector<1x32xf32> to vector<1x32xf32>
    %52 = vector.broadcast %51 : vector<1x32xf32> to vector<8x32xf32>
    %53 = vector.shape_cast %46 : vector<1x96xf32> to vector<1x96xf32>
    %54 = vector.broadcast %53 : vector<1x96xf32> to vector<8x96xf32>
    %cst_21 = arith.constant dense<0.000000e+00> : vector<64x96xf32>
    %55 = tpu.matmul %7, %41, %cst_21 {dimension_numbers = #tpu.dot_dimension_numbers<[1], [0], [0], [1], [0, 0, 1, 1], [], []>} : vector<64x16xf32>, vector<16x96xf32>, vector<64x96xf32> -> vector<64x96xf32>
    %56 = vector.broadcast %45 : vector<1x96xf32> to vector<64x96xf32>
    %57 = arith.addf %55, %56 : vector<64x96xf32>
    %cst_22 = arith.constant 0.000000e+00 : f32
    %58 = vector.broadcast %cst_22 : f32 to vector<8x32xf32>
    %cst_23 = arith.constant 0.000000e+00 : f32
    %59 = vector.broadcast %cst_23 : f32 to vector<8x32xf32>
    %60 = vector.extract_strided_slice %57 {offsets = [0, 0], sizes = [8, 96], strides = [1, 1]} : vector<64x96xf32> to vector<8x96xf32>
    %cst_24 = arith.constant dense<0.000000e+00> : vector<8x96xf32>
    %61 = tpu.matmul %58, %43, %cst_24 {dimension_numbers = #tpu.dot_dimension_numbers<[1], [0], [0], [1], [0, 0, 1, 1], [], []>} : vector<8x32xf32>, vector<32x96xf32>, vector<8x96xf32> -> vector<8x96xf32>
    %62 = vector.extract_strided_slice %60 {offsets = [0, 0], sizes = [8, 32], strides = [1, 1]} : vector<8x96xf32> to vector<8x32xf32>
    %63 = vector.extract_strided_slice %61 {offsets = [0, 0], sizes = [8, 32], strides = [1, 1]} : vector<8x96xf32> to vector<8x32xf32>
    %64 = arith.addf %62, %63 : vector<8x32xf32>
    %65 = arith.negf %64 : vector<8x32xf32>
    %66 = math.exp %65 : vector<8x32xf32>
    %cst_25 = arith.constant 1.000000e+00 : f32
    %67 = vector.broadcast %cst_25 : f32 to vector<8x32xf32>
    %68 = arith.addf %67, %66 : vector<8x32xf32>
    %69 = arith.divf %67, %68 : vector<8x32xf32>
    %70 = vector.extract_strided_slice %60 {offsets = [0, 32], sizes = [8, 32], strides = [1, 1]} : vector<8x96xf32> to vector<8x32xf32>
    %71 = vector.extract_strided_slice %61 {offsets = [0, 32], sizes = [8, 32], strides = [1, 1]} : vector<8x96xf32> to vector<8x32xf32>
    %72 = arith.addf %70, %71 : vector<8x32xf32>
    %73 = arith.negf %72 : vector<8x32xf32>
    %74 = math.exp %73 : vector<8x32xf32>
    %cst_26 = arith.constant 1.000000e+00 : f32
    %75 = vector.broadcast %cst_26 : f32 to vector<8x32xf32>
    %76 = arith.addf %75, %74 : vector<8x32xf32>
    %77 = arith.divf %75, %76 : vector<8x32xf32>
    %78 = vector.extract_strided_slice %60 {offsets = [0, 64], sizes = [8, 32], strides = [1, 1]} : vector<8x96xf32> to vector<8x32xf32>
    %79 = vector.extract_strided_slice %61 {offsets = [0, 64], sizes = [8, 32], strides = [1, 1]} : vector<8x96xf32> to vector<8x32xf32>
    %80 = arith.addf %79, %49 : vector<8x32xf32>
    %81 = arith.mulf %69, %80 : vector<8x32xf32>
    %82 = arith.addf %78, %81 : vector<8x32xf32>
    %83 = math.tanh %82 : vector<8x32xf32>
    %cst_27 = arith.constant 1.000000e+00 : f32
    %84 = vector.broadcast %cst_27 : f32 to vector<8x32xf32>
    %85 = arith.subf %84, %77 : vector<8x32xf32>
    %86 = arith.mulf %85, %83 : vector<8x32xf32>
    %87 = arith.mulf %77, %58 : vector<8x32xf32>
    %88 = arith.addf %86, %87 : vector<8x32xf32>
    %89 = arith.select %12, %88, %58 : vector<8x32xi1>, vector<8x32xf32>
    %90 = vector.extract_strided_slice %57 {offsets = [8, 0], sizes = [8, 96], strides = [1, 1]} : vector<64x96xf32> to vector<8x96xf32>
    %cst_28 = arith.constant dense<0.000000e+00> : vector<8x96xf32>
    %91 = tpu.matmul %89, %43, %cst_28 {dimension_numbers = #tpu.dot_dimension_numbers<[1], [0], [0], [1], [0, 0, 1, 1], [], []>} : vector<8x32xf32>, vector<32x96xf32>, vector<8x96xf32> -> vector<8x96xf32>
    %92 = vector.extract_strided_slice %90 {offsets = [0, 0], sizes = [8, 32], strides = [1, 1]} : vector<8x96xf32> to vector<8x32xf32>
    %93 = vector.extract_strided_slice %91 {offsets = [0, 0], sizes = [8, 32], strides = [1, 1]} : vector<8x96xf32> to vector<8x32xf32>
    %94 = arith.addf %92, %93 : vector<8x32xf32>
    %95 = arith.negf %94 : vector<8x32xf32>
    %96 = math.exp %95 : vector<8x32xf32>
    %cst_29 = arith.constant 1.000000e+00 : f32
    %97 = vector.broadcast %cst_29 : f32 to vector<8x32xf32>
    %98 = arith.addf %97, %96 : vector<8x32xf32>
    %99 = arith.divf %97, %98 : vector<8x32xf32>
    %100 = vector.extract_strided_slice %90 {offsets = [0, 32], sizes = [8, 32], strides = [1, 1]} : vector<8x96xf32> to vector<8x32xf32>
    %101 = vector.extract_strided_slice %91 {offsets = [0, 32], sizes = [8, 32], strides = [1, 1]} : vector<8x96xf32> to vector<8x32xf32>
    %102 = arith.addf %100, %101 : vector<8x32xf32>
    %103 = arith.negf %102 : vector<8x32xf32>
    %104 = math.exp %103 : vector<8x32xf32>
    %cst_30 = arith.constant 1.000000e+00 : f32
    %105 = vector.broadcast %cst_30 : f32 to vector<8x32xf32>
    %106 = arith.addf %105, %104 : vector<8x32xf32>
    %107 = arith.divf %105, %106 : vector<8x32xf32>
    %108 = vector.extract_strided_slice %90 {offsets = [0, 64], sizes = [8, 32], strides = [1, 1]} : vector<8x96xf32> to vector<8x32xf32>
    %109 = vector.extract_strided_slice %91 {offsets = [0, 64], sizes = [8, 32], strides = [1, 1]} : vector<8x96xf32> to vector<8x32xf32>
    %110 = arith.addf %109, %49 : vector<8x32xf32>
    %111 = arith.mulf %99, %110 : vector<8x32xf32>
    %112 = arith.addf %108, %111 : vector<8x32xf32>
    %113 = math.tanh %112 : vector<8x32xf32>
    %cst_31 = arith.constant 1.000000e+00 : f32
    %114 = vector.broadcast %cst_31 : f32 to vector<8x32xf32>
    %115 = arith.subf %114, %107 : vector<8x32xf32>
    %116 = arith.mulf %115, %113 : vector<8x32xf32>
    %117 = arith.mulf %107, %89 : vector<8x32xf32>
    %118 = arith.addf %116, %117 : vector<8x32xf32>
    %119 = arith.select %16, %118, %89 : vector<8x32xi1>, vector<8x32xf32>
    %cst_32 = arith.constant dense<0.000000e+00> : vector<8x96xf32>
    %120 = tpu.matmul %89, %42, %cst_32 {dimension_numbers = #tpu.dot_dimension_numbers<[1], [0], [0], [1], [0, 0, 1, 1], [], []>} : vector<8x32xf32>, vector<32x96xf32>, vector<8x96xf32> -> vector<8x96xf32>
    %121 = arith.addf %120, %54 : vector<8x96xf32>
    %cst_33 = arith.constant dense<0.000000e+00> : vector<8x96xf32>
    %122 = tpu.matmul %59, %44, %cst_33 {dimension_numbers = #tpu.dot_dimension_numbers<[1], [0], [0], [1], [0, 0, 1, 1], [], []>} : vector<8x32xf32>, vector<32x96xf32>, vector<8x96xf32> -> vector<8x96xf32>
    %123 = vector.extract_strided_slice %121 {offsets = [0, 0], sizes = [8, 32], strides = [1, 1]} : vector<8x96xf32> to vector<8x32xf32>
    %124 = vector.extract_strided_slice %122 {offsets = [0, 0], sizes = [8, 32], strides = [1, 1]} : vector<8x96xf32> to vector<8x32xf32>
    %125 = arith.addf %123, %124 : vector<8x32xf32>
    %126 = arith.negf %125 : vector<8x32xf32>
    %127 = math.exp %126 : vector<8x32xf32>
    %cst_34 = arith.constant 1.000000e+00 : f32
    %128 = vector.broadcast %cst_34 : f32 to vector<8x32xf32>
    %129 = arith.addf %128, %127 : vector<8x32xf32>
    %130 = arith.divf %128, %129 : vector<8x32xf32>
    %131 = vector.extract_strided_slice %121 {offsets = [0, 32], sizes = [8, 32], strides = [1, 1]} : vector<8x96xf32> to vector<8x32xf32>
    %132 = vector.extract_strided_slice %122 {offsets = [0, 32], sizes = [8, 32], strides = [1, 1]} : vector<8x96xf32> to vector<8x32xf32>
    %133 = arith.addf %131, %132 : vector<8x32xf32>
    %134 = arith.negf %133 : vector<8x32xf32>
    %135 = math.exp %134 : vector<8x32xf32>
    %cst_35 = arith.constant 1.000000e+00 : f32
    %136 = vector.broadcast %cst_35 : f32 to vector<8x32xf32>
    %137 = arith.addf %136, %135 : vector<8x32xf32>
    %138 = arith.divf %136, %137 : vector<8x32xf32>
    %139 = vector.extract_strided_slice %121 {offsets = [0, 64], sizes = [8, 32], strides = [1, 1]} : vector<8x96xf32> to vector<8x32xf32>
    %140 = vector.extract_strided_slice %122 {offsets = [0, 64], sizes = [8, 32], strides = [1, 1]} : vector<8x96xf32> to vector<8x32xf32>
    %141 = arith.addf %140, %52 : vector<8x32xf32>
    %142 = arith.mulf %130, %141 : vector<8x32xf32>
    %143 = arith.addf %139, %142 : vector<8x32xf32>
    %144 = math.tanh %143 : vector<8x32xf32>
    %cst_36 = arith.constant 1.000000e+00 : f32
    %145 = vector.broadcast %cst_36 : f32 to vector<8x32xf32>
    %146 = arith.subf %145, %138 : vector<8x32xf32>
    %147 = arith.mulf %146, %144 : vector<8x32xf32>
    %148 = arith.mulf %138, %59 : vector<8x32xf32>
    %149 = arith.addf %147, %148 : vector<8x32xf32>
    %150 = arith.select %12, %149, %59 : vector<8x32xi1>, vector<8x32xf32>
    %151 = vector.extract_strided_slice %57 {offsets = [16, 0], sizes = [8, 96], strides = [1, 1]} : vector<64x96xf32> to vector<8x96xf32>
    %cst_37 = arith.constant dense<0.000000e+00> : vector<8x96xf32>
    %152 = tpu.matmul %119, %43, %cst_37 {dimension_numbers = #tpu.dot_dimension_numbers<[1], [0], [0], [1], [0, 0, 1, 1], [], []>} : vector<8x32xf32>, vector<32x96xf32>, vector<8x96xf32> -> vector<8x96xf32>
    %153 = vector.extract_strided_slice %151 {offsets = [0, 0], sizes = [8, 32], strides = [1, 1]} : vector<8x96xf32> to vector<8x32xf32>
    %154 = vector.extract_strided_slice %152 {offsets = [0, 0], sizes = [8, 32], strides = [1, 1]} : vector<8x96xf32> to vector<8x32xf32>
    %155 = arith.addf %153, %154 : vector<8x32xf32>
    %156 = arith.negf %155 : vector<8x32xf32>
    %157 = math.exp %156 : vector<8x32xf32>
    %cst_38 = arith.constant 1.000000e+00 : f32
    %158 = vector.broadcast %cst_38 : f32 to vector<8x32xf32>
    %159 = arith.addf %158, %157 : vector<8x32xf32>
    %160 = arith.divf %158, %159 : vector<8x32xf32>
    %161 = vector.extract_strided_slice %151 {offsets = [0, 32], sizes = [8, 32], strides = [1, 1]} : vector<8x96xf32> to vector<8x32xf32>
    %162 = vector.extract_strided_slice %152 {offsets = [0, 32], sizes = [8, 32], strides = [1, 1]} : vector<8x96xf32> to vector<8x32xf32>
    %163 = arith.addf %161, %162 : vector<8x32xf32>
    %164 = arith.negf %163 : vector<8x32xf32>
    %165 = math.exp %164 : vector<8x32xf32>
    %cst_39 = arith.constant 1.000000e+00 : f32
    %166 = vector.broadcast %cst_39 : f32 to vector<8x32xf32>
    %167 = arith.addf %166, %165 : vector<8x32xf32>
    %168 = arith.divf %166, %167 : vector<8x32xf32>
    %169 = vector.extract_strided_slice %151 {offsets = [0, 64], sizes = [8, 32], strides = [1, 1]} : vector<8x96xf32> to vector<8x32xf32>
    %170 = vector.extract_strided_slice %152 {offsets = [0, 64], sizes = [8, 32], strides = [1, 1]} : vector<8x96xf32> to vector<8x32xf32>
    %171 = arith.addf %170, %49 : vector<8x32xf32>
    %172 = arith.mulf %160, %171 : vector<8x32xf32>
    %173 = arith.addf %169, %172 : vector<8x32xf32>
    %174 = math.tanh %173 : vector<8x32xf32>
    %cst_40 = arith.constant 1.000000e+00 : f32
    %175 = vector.broadcast %cst_40 : f32 to vector<8x32xf32>
    %176 = arith.subf %175, %168 : vector<8x32xf32>
    %177 = arith.mulf %176, %174 : vector<8x32xf32>
    %178 = arith.mulf %168, %119 : vector<8x32xf32>
    %179 = arith.addf %177, %178 : vector<8x32xf32>
    %180 = arith.select %20, %179, %119 : vector<8x32xi1>, vector<8x32xf32>
    %cst_41 = arith.constant dense<0.000000e+00> : vector<8x96xf32>
    %181 = tpu.matmul %119, %42, %cst_41 {dimension_numbers = #tpu.dot_dimension_numbers<[1], [0], [0], [1], [0, 0, 1, 1], [], []>} : vector<8x32xf32>, vector<32x96xf32>, vector<8x96xf32> -> vector<8x96xf32>
    %182 = arith.addf %181, %54 : vector<8x96xf32>
    %cst_42 = arith.constant dense<0.000000e+00> : vector<8x96xf32>
    %183 = tpu.matmul %150, %44, %cst_42 {dimension_numbers = #tpu.dot_dimension_numbers<[1], [0], [0], [1], [0, 0, 1, 1], [], []>} : vector<8x32xf32>, vector<32x96xf32>, vector<8x96xf32> -> vector<8x96xf32>
    %184 = vector.extract_strided_slice %182 {offsets = [0, 0], sizes = [8, 32], strides = [1, 1]} : vector<8x96xf32> to vector<8x32xf32>
    %185 = vector.extract_strided_slice %183 {offsets = [0, 0], sizes = [8, 32], strides = [1, 1]} : vector<8x96xf32> to vector<8x32xf32>
    %186 = arith.addf %184, %185 : vector<8x32xf32>
    %187 = arith.negf %186 : vector<8x32xf32>
    %188 = math.exp %187 : vector<8x32xf32>
    %cst_43 = arith.constant 1.000000e+00 : f32
    %189 = vector.broadcast %cst_43 : f32 to vector<8x32xf32>
    %190 = arith.addf %189, %188 : vector<8x32xf32>
    %191 = arith.divf %189, %190 : vector<8x32xf32>
    %192 = vector.extract_strided_slice %182 {offsets = [0, 32], sizes = [8, 32], strides = [1, 1]} : vector<8x96xf32> to vector<8x32xf32>
    %193 = vector.extract_strided_slice %183 {offsets = [0, 32], sizes = [8, 32], strides = [1, 1]} : vector<8x96xf32> to vector<8x32xf32>
    %194 = arith.addf %192, %193 : vector<8x32xf32>
    %195 = arith.negf %194 : vector<8x32xf32>
    %196 = math.exp %195 : vector<8x32xf32>
    %cst_44 = arith.constant 1.000000e+00 : f32
    %197 = vector.broadcast %cst_44 : f32 to vector<8x32xf32>
    %198 = arith.addf %197, %196 : vector<8x32xf32>
    %199 = arith.divf %197, %198 : vector<8x32xf32>
    %200 = vector.extract_strided_slice %182 {offsets = [0, 64], sizes = [8, 32], strides = [1, 1]} : vector<8x96xf32> to vector<8x32xf32>
    %201 = vector.extract_strided_slice %183 {offsets = [0, 64], sizes = [8, 32], strides = [1, 1]} : vector<8x96xf32> to vector<8x32xf32>
    %202 = arith.addf %201, %52 : vector<8x32xf32>
    %203 = arith.mulf %191, %202 : vector<8x32xf32>
    %204 = arith.addf %200, %203 : vector<8x32xf32>
    %205 = math.tanh %204 : vector<8x32xf32>
    %cst_45 = arith.constant 1.000000e+00 : f32
    %206 = vector.broadcast %cst_45 : f32 to vector<8x32xf32>
    %207 = arith.subf %206, %199 : vector<8x32xf32>
    %208 = arith.mulf %207, %205 : vector<8x32xf32>
    %209 = arith.mulf %199, %150 : vector<8x32xf32>
    %210 = arith.addf %208, %209 : vector<8x32xf32>
    %211 = arith.select %16, %210, %150 : vector<8x32xi1>, vector<8x32xf32>
    %212 = vector.extract_strided_slice %57 {offsets = [24, 0], sizes = [8, 96], strides = [1, 1]} : vector<64x96xf32> to vector<8x96xf32>
    %cst_46 = arith.constant dense<0.000000e+00> : vector<8x96xf32>
    %213 = tpu.matmul %180, %43, %cst_46 {dimension_numbers = #tpu.dot_dimension_numbers<[1], [0], [0], [1], [0, 0, 1, 1], [], []>} : vector<8x32xf32>, vector<32x96xf32>, vector<8x96xf32> -> vector<8x96xf32>
    %214 = vector.extract_strided_slice %212 {offsets = [0, 0], sizes = [8, 32], strides = [1, 1]} : vector<8x96xf32> to vector<8x32xf32>
    %215 = vector.extract_strided_slice %213 {offsets = [0, 0], sizes = [8, 32], strides = [1, 1]} : vector<8x96xf32> to vector<8x32xf32>
    %216 = arith.addf %214, %215 : vector<8x32xf32>
    %217 = arith.negf %216 : vector<8x32xf32>
    %218 = math.exp %217 : vector<8x32xf32>
    %cst_47 = arith.constant 1.000000e+00 : f32
    %219 = vector.broadcast %cst_47 : f32 to vector<8x32xf32>
    %220 = arith.addf %219, %218 : vector<8x32xf32>
    %221 = arith.divf %219, %220 : vector<8x32xf32>
    %222 = vector.extract_strided_slice %212 {offsets = [0, 32], sizes = [8, 32], strides = [1, 1]} : vector<8x96xf32> to vector<8x32xf32>
    %223 = vector.extract_strided_slice %213 {offsets = [0, 32], sizes = [8, 32], strides = [1, 1]} : vector<8x96xf32> to vector<8x32xf32>
    %224 = arith.addf %222, %223 : vector<8x32xf32>
    %225 = arith.negf %224 : vector<8x32xf32>
    %226 = math.exp %225 : vector<8x32xf32>
    %cst_48 = arith.constant 1.000000e+00 : f32
    %227 = vector.broadcast %cst_48 : f32 to vector<8x32xf32>
    %228 = arith.addf %227, %226 : vector<8x32xf32>
    %229 = arith.divf %227, %228 : vector<8x32xf32>
    %230 = vector.extract_strided_slice %212 {offsets = [0, 64], sizes = [8, 32], strides = [1, 1]} : vector<8x96xf32> to vector<8x32xf32>
    %231 = vector.extract_strided_slice %213 {offsets = [0, 64], sizes = [8, 32], strides = [1, 1]} : vector<8x96xf32> to vector<8x32xf32>
    %232 = arith.addf %231, %49 : vector<8x32xf32>
    %233 = arith.mulf %221, %232 : vector<8x32xf32>
    %234 = arith.addf %230, %233 : vector<8x32xf32>
    %235 = math.tanh %234 : vector<8x32xf32>
    %cst_49 = arith.constant 1.000000e+00 : f32
    %236 = vector.broadcast %cst_49 : f32 to vector<8x32xf32>
    %237 = arith.subf %236, %229 : vector<8x32xf32>
    %238 = arith.mulf %237, %235 : vector<8x32xf32>
    %239 = arith.mulf %229, %180 : vector<8x32xf32>
    %240 = arith.addf %238, %239 : vector<8x32xf32>
    %241 = arith.select %24, %240, %180 : vector<8x32xi1>, vector<8x32xf32>
    %cst_50 = arith.constant dense<0.000000e+00> : vector<8x96xf32>
    %242 = tpu.matmul %180, %42, %cst_50 {dimension_numbers = #tpu.dot_dimension_numbers<[1], [0], [0], [1], [0, 0, 1, 1], [], []>} : vector<8x32xf32>, vector<32x96xf32>, vector<8x96xf32> -> vector<8x96xf32>
    %243 = arith.addf %242, %54 : vector<8x96xf32>
    %cst_51 = arith.constant dense<0.000000e+00> : vector<8x96xf32>
    %244 = tpu.matmul %211, %44, %cst_51 {dimension_numbers = #tpu.dot_dimension_numbers<[1], [0], [0], [1], [0, 0, 1, 1], [], []>} : vector<8x32xf32>, vector<32x96xf32>, vector<8x96xf32> -> vector<8x96xf32>
    %245 = vector.extract_strided_slice %243 {offsets = [0, 0], sizes = [8, 32], strides = [1, 1]} : vector<8x96xf32> to vector<8x32xf32>
    %246 = vector.extract_strided_slice %244 {offsets = [0, 0], sizes = [8, 32], strides = [1, 1]} : vector<8x96xf32> to vector<8x32xf32>
    %247 = arith.addf %245, %246 : vector<8x32xf32>
    %248 = arith.negf %247 : vector<8x32xf32>
    %249 = math.exp %248 : vector<8x32xf32>
    %cst_52 = arith.constant 1.000000e+00 : f32
    %250 = vector.broadcast %cst_52 : f32 to vector<8x32xf32>
    %251 = arith.addf %250, %249 : vector<8x32xf32>
    %252 = arith.divf %250, %251 : vector<8x32xf32>
    %253 = vector.extract_strided_slice %243 {offsets = [0, 32], sizes = [8, 32], strides = [1, 1]} : vector<8x96xf32> to vector<8x32xf32>
    %254 = vector.extract_strided_slice %244 {offsets = [0, 32], sizes = [8, 32], strides = [1, 1]} : vector<8x96xf32> to vector<8x32xf32>
    %255 = arith.addf %253, %254 : vector<8x32xf32>
    %256 = arith.negf %255 : vector<8x32xf32>
    %257 = math.exp %256 : vector<8x32xf32>
    %cst_53 = arith.constant 1.000000e+00 : f32
    %258 = vector.broadcast %cst_53 : f32 to vector<8x32xf32>
    %259 = arith.addf %258, %257 : vector<8x32xf32>
    %260 = arith.divf %258, %259 : vector<8x32xf32>
    %261 = vector.extract_strided_slice %243 {offsets = [0, 64], sizes = [8, 32], strides = [1, 1]} : vector<8x96xf32> to vector<8x32xf32>
    %262 = vector.extract_strided_slice %244 {offsets = [0, 64], sizes = [8, 32], strides = [1, 1]} : vector<8x96xf32> to vector<8x32xf32>
    %263 = arith.addf %262, %52 : vector<8x32xf32>
    %264 = arith.mulf %252, %263 : vector<8x32xf32>
    %265 = arith.addf %261, %264 : vector<8x32xf32>
    %266 = math.tanh %265 : vector<8x32xf32>
    %cst_54 = arith.constant 1.000000e+00 : f32
    %267 = vector.broadcast %cst_54 : f32 to vector<8x32xf32>
    %268 = arith.subf %267, %260 : vector<8x32xf32>
    %269 = arith.mulf %268, %266 : vector<8x32xf32>
    %270 = arith.mulf %260, %211 : vector<8x32xf32>
    %271 = arith.addf %269, %270 : vector<8x32xf32>
    %272 = arith.select %20, %271, %211 : vector<8x32xi1>, vector<8x32xf32>
    %273 = vector.extract_strided_slice %57 {offsets = [32, 0], sizes = [8, 96], strides = [1, 1]} : vector<64x96xf32> to vector<8x96xf32>
    %cst_55 = arith.constant dense<0.000000e+00> : vector<8x96xf32>
    %274 = tpu.matmul %241, %43, %cst_55 {dimension_numbers = #tpu.dot_dimension_numbers<[1], [0], [0], [1], [0, 0, 1, 1], [], []>} : vector<8x32xf32>, vector<32x96xf32>, vector<8x96xf32> -> vector<8x96xf32>
    %275 = vector.extract_strided_slice %273 {offsets = [0, 0], sizes = [8, 32], strides = [1, 1]} : vector<8x96xf32> to vector<8x32xf32>
    %276 = vector.extract_strided_slice %274 {offsets = [0, 0], sizes = [8, 32], strides = [1, 1]} : vector<8x96xf32> to vector<8x32xf32>
    %277 = arith.addf %275, %276 : vector<8x32xf32>
    %278 = arith.negf %277 : vector<8x32xf32>
    %279 = math.exp %278 : vector<8x32xf32>
    %cst_56 = arith.constant 1.000000e+00 : f32
    %280 = vector.broadcast %cst_56 : f32 to vector<8x32xf32>
    %281 = arith.addf %280, %279 : vector<8x32xf32>
    %282 = arith.divf %280, %281 : vector<8x32xf32>
    %283 = vector.extract_strided_slice %273 {offsets = [0, 32], sizes = [8, 32], strides = [1, 1]} : vector<8x96xf32> to vector<8x32xf32>
    %284 = vector.extract_strided_slice %274 {offsets = [0, 32], sizes = [8, 32], strides = [1, 1]} : vector<8x96xf32> to vector<8x32xf32>
    %285 = arith.addf %283, %284 : vector<8x32xf32>
    %286 = arith.negf %285 : vector<8x32xf32>
    %287 = math.exp %286 : vector<8x32xf32>
    %cst_57 = arith.constant 1.000000e+00 : f32
    %288 = vector.broadcast %cst_57 : f32 to vector<8x32xf32>
    %289 = arith.addf %288, %287 : vector<8x32xf32>
    %290 = arith.divf %288, %289 : vector<8x32xf32>
    %291 = vector.extract_strided_slice %273 {offsets = [0, 64], sizes = [8, 32], strides = [1, 1]} : vector<8x96xf32> to vector<8x32xf32>
    %292 = vector.extract_strided_slice %274 {offsets = [0, 64], sizes = [8, 32], strides = [1, 1]} : vector<8x96xf32> to vector<8x32xf32>
    %293 = arith.addf %292, %49 : vector<8x32xf32>
    %294 = arith.mulf %282, %293 : vector<8x32xf32>
    %295 = arith.addf %291, %294 : vector<8x32xf32>
    %296 = math.tanh %295 : vector<8x32xf32>
    %cst_58 = arith.constant 1.000000e+00 : f32
    %297 = vector.broadcast %cst_58 : f32 to vector<8x32xf32>
    %298 = arith.subf %297, %290 : vector<8x32xf32>
    %299 = arith.mulf %298, %296 : vector<8x32xf32>
    %300 = arith.mulf %290, %241 : vector<8x32xf32>
    %301 = arith.addf %299, %300 : vector<8x32xf32>
    %302 = arith.select %28, %301, %241 : vector<8x32xi1>, vector<8x32xf32>
    %cst_59 = arith.constant dense<0.000000e+00> : vector<8x96xf32>
    %303 = tpu.matmul %241, %42, %cst_59 {dimension_numbers = #tpu.dot_dimension_numbers<[1], [0], [0], [1], [0, 0, 1, 1], [], []>} : vector<8x32xf32>, vector<32x96xf32>, vector<8x96xf32> -> vector<8x96xf32>
    %304 = arith.addf %303, %54 : vector<8x96xf32>
    %cst_60 = arith.constant dense<0.000000e+00> : vector<8x96xf32>
    %305 = tpu.matmul %272, %44, %cst_60 {dimension_numbers = #tpu.dot_dimension_numbers<[1], [0], [0], [1], [0, 0, 1, 1], [], []>} : vector<8x32xf32>, vector<32x96xf32>, vector<8x96xf32> -> vector<8x96xf32>
    %306 = vector.extract_strided_slice %304 {offsets = [0, 0], sizes = [8, 32], strides = [1, 1]} : vector<8x96xf32> to vector<8x32xf32>
    %307 = vector.extract_strided_slice %305 {offsets = [0, 0], sizes = [8, 32], strides = [1, 1]} : vector<8x96xf32> to vector<8x32xf32>
    %308 = arith.addf %306, %307 : vector<8x32xf32>
    %309 = arith.negf %308 : vector<8x32xf32>
    %310 = math.exp %309 : vector<8x32xf32>
    %cst_61 = arith.constant 1.000000e+00 : f32
    %311 = vector.broadcast %cst_61 : f32 to vector<8x32xf32>
    %312 = arith.addf %311, %310 : vector<8x32xf32>
    %313 = arith.divf %311, %312 : vector<8x32xf32>
    %314 = vector.extract_strided_slice %304 {offsets = [0, 32], sizes = [8, 32], strides = [1, 1]} : vector<8x96xf32> to vector<8x32xf32>
    %315 = vector.extract_strided_slice %305 {offsets = [0, 32], sizes = [8, 32], strides = [1, 1]} : vector<8x96xf32> to vector<8x32xf32>
    %316 = arith.addf %314, %315 : vector<8x32xf32>
    %317 = arith.negf %316 : vector<8x32xf32>
    %318 = math.exp %317 : vector<8x32xf32>
    %cst_62 = arith.constant 1.000000e+00 : f32
    %319 = vector.broadcast %cst_62 : f32 to vector<8x32xf32>
    %320 = arith.addf %319, %318 : vector<8x32xf32>
    %321 = arith.divf %319, %320 : vector<8x32xf32>
    %322 = vector.extract_strided_slice %304 {offsets = [0, 64], sizes = [8, 32], strides = [1, 1]} : vector<8x96xf32> to vector<8x32xf32>
    %323 = vector.extract_strided_slice %305 {offsets = [0, 64], sizes = [8, 32], strides = [1, 1]} : vector<8x96xf32> to vector<8x32xf32>
    %324 = arith.addf %323, %52 : vector<8x32xf32>
    %325 = arith.mulf %313, %324 : vector<8x32xf32>
    %326 = arith.addf %322, %325 : vector<8x32xf32>
    %327 = math.tanh %326 : vector<8x32xf32>
    %cst_63 = arith.constant 1.000000e+00 : f32
    %328 = vector.broadcast %cst_63 : f32 to vector<8x32xf32>
    %329 = arith.subf %328, %321 : vector<8x32xf32>
    %330 = arith.mulf %329, %327 : vector<8x32xf32>
    %331 = arith.mulf %321, %272 : vector<8x32xf32>
    %332 = arith.addf %330, %331 : vector<8x32xf32>
    %333 = arith.select %24, %332, %272 : vector<8x32xi1>, vector<8x32xf32>
    %334 = vector.extract_strided_slice %57 {offsets = [40, 0], sizes = [8, 96], strides = [1, 1]} : vector<64x96xf32> to vector<8x96xf32>
    %cst_64 = arith.constant dense<0.000000e+00> : vector<8x96xf32>
    %335 = tpu.matmul %302, %43, %cst_64 {dimension_numbers = #tpu.dot_dimension_numbers<[1], [0], [0], [1], [0, 0, 1, 1], [], []>} : vector<8x32xf32>, vector<32x96xf32>, vector<8x96xf32> -> vector<8x96xf32>
    %336 = vector.extract_strided_slice %334 {offsets = [0, 0], sizes = [8, 32], strides = [1, 1]} : vector<8x96xf32> to vector<8x32xf32>
    %337 = vector.extract_strided_slice %335 {offsets = [0, 0], sizes = [8, 32], strides = [1, 1]} : vector<8x96xf32> to vector<8x32xf32>
    %338 = arith.addf %336, %337 : vector<8x32xf32>
    %339 = arith.negf %338 : vector<8x32xf32>
    %340 = math.exp %339 : vector<8x32xf32>
    %cst_65 = arith.constant 1.000000e+00 : f32
    %341 = vector.broadcast %cst_65 : f32 to vector<8x32xf32>
    %342 = arith.addf %341, %340 : vector<8x32xf32>
    %343 = arith.divf %341, %342 : vector<8x32xf32>
    %344 = vector.extract_strided_slice %334 {offsets = [0, 32], sizes = [8, 32], strides = [1, 1]} : vector<8x96xf32> to vector<8x32xf32>
    %345 = vector.extract_strided_slice %335 {offsets = [0, 32], sizes = [8, 32], strides = [1, 1]} : vector<8x96xf32> to vector<8x32xf32>
    %346 = arith.addf %344, %345 : vector<8x32xf32>
    %347 = arith.negf %346 : vector<8x32xf32>
    %348 = math.exp %347 : vector<8x32xf32>
    %cst_66 = arith.constant 1.000000e+00 : f32
    %349 = vector.broadcast %cst_66 : f32 to vector<8x32xf32>
    %350 = arith.addf %349, %348 : vector<8x32xf32>
    %351 = arith.divf %349, %350 : vector<8x32xf32>
    %352 = vector.extract_strided_slice %334 {offsets = [0, 64], sizes = [8, 32], strides = [1, 1]} : vector<8x96xf32> to vector<8x32xf32>
    %353 = vector.extract_strided_slice %335 {offsets = [0, 64], sizes = [8, 32], strides = [1, 1]} : vector<8x96xf32> to vector<8x32xf32>
    %354 = arith.addf %353, %49 : vector<8x32xf32>
    %355 = arith.mulf %343, %354 : vector<8x32xf32>
    %356 = arith.addf %352, %355 : vector<8x32xf32>
    %357 = math.tanh %356 : vector<8x32xf32>
    %cst_67 = arith.constant 1.000000e+00 : f32
    %358 = vector.broadcast %cst_67 : f32 to vector<8x32xf32>
    %359 = arith.subf %358, %351 : vector<8x32xf32>
    %360 = arith.mulf %359, %357 : vector<8x32xf32>
    %361 = arith.mulf %351, %302 : vector<8x32xf32>
    %362 = arith.addf %360, %361 : vector<8x32xf32>
    %363 = arith.select %32, %362, %302 : vector<8x32xi1>, vector<8x32xf32>
    %cst_68 = arith.constant dense<0.000000e+00> : vector<8x96xf32>
    %364 = tpu.matmul %302, %42, %cst_68 {dimension_numbers = #tpu.dot_dimension_numbers<[1], [0], [0], [1], [0, 0, 1, 1], [], []>} : vector<8x32xf32>, vector<32x96xf32>, vector<8x96xf32> -> vector<8x96xf32>
    %365 = arith.addf %364, %54 : vector<8x96xf32>
    %cst_69 = arith.constant dense<0.000000e+00> : vector<8x96xf32>
    %366 = tpu.matmul %333, %44, %cst_69 {dimension_numbers = #tpu.dot_dimension_numbers<[1], [0], [0], [1], [0, 0, 1, 1], [], []>} : vector<8x32xf32>, vector<32x96xf32>, vector<8x96xf32> -> vector<8x96xf32>
    %367 = vector.extract_strided_slice %365 {offsets = [0, 0], sizes = [8, 32], strides = [1, 1]} : vector<8x96xf32> to vector<8x32xf32>
    %368 = vector.extract_strided_slice %366 {offsets = [0, 0], sizes = [8, 32], strides = [1, 1]} : vector<8x96xf32> to vector<8x32xf32>
    %369 = arith.addf %367, %368 : vector<8x32xf32>
    %370 = arith.negf %369 : vector<8x32xf32>
    %371 = math.exp %370 : vector<8x32xf32>
    %cst_70 = arith.constant 1.000000e+00 : f32
    %372 = vector.broadcast %cst_70 : f32 to vector<8x32xf32>
    %373 = arith.addf %372, %371 : vector<8x32xf32>
    %374 = arith.divf %372, %373 : vector<8x32xf32>
    %375 = vector.extract_strided_slice %365 {offsets = [0, 32], sizes = [8, 32], strides = [1, 1]} : vector<8x96xf32> to vector<8x32xf32>
    %376 = vector.extract_strided_slice %366 {offsets = [0, 32], sizes = [8, 32], strides = [1, 1]} : vector<8x96xf32> to vector<8x32xf32>
    %377 = arith.addf %375, %376 : vector<8x32xf32>
    %378 = arith.negf %377 : vector<8x32xf32>
    %379 = math.exp %378 : vector<8x32xf32>
    %cst_71 = arith.constant 1.000000e+00 : f32
    %380 = vector.broadcast %cst_71 : f32 to vector<8x32xf32>
    %381 = arith.addf %380, %379 : vector<8x32xf32>
    %382 = arith.divf %380, %381 : vector<8x32xf32>
    %383 = vector.extract_strided_slice %365 {offsets = [0, 64], sizes = [8, 32], strides = [1, 1]} : vector<8x96xf32> to vector<8x32xf32>
    %384 = vector.extract_strided_slice %366 {offsets = [0, 64], sizes = [8, 32], strides = [1, 1]} : vector<8x96xf32> to vector<8x32xf32>
    %385 = arith.addf %384, %52 : vector<8x32xf32>
    %386 = arith.mulf %374, %385 : vector<8x32xf32>
    %387 = arith.addf %383, %386 : vector<8x32xf32>
    %388 = math.tanh %387 : vector<8x32xf32>
    %cst_72 = arith.constant 1.000000e+00 : f32
    %389 = vector.broadcast %cst_72 : f32 to vector<8x32xf32>
    %390 = arith.subf %389, %382 : vector<8x32xf32>
    %391 = arith.mulf %390, %388 : vector<8x32xf32>
    %392 = arith.mulf %382, %333 : vector<8x32xf32>
    %393 = arith.addf %391, %392 : vector<8x32xf32>
    %394 = arith.select %28, %393, %333 : vector<8x32xi1>, vector<8x32xf32>
    %395 = vector.extract_strided_slice %57 {offsets = [48, 0], sizes = [8, 96], strides = [1, 1]} : vector<64x96xf32> to vector<8x96xf32>
    %cst_73 = arith.constant dense<0.000000e+00> : vector<8x96xf32>
    %396 = tpu.matmul %363, %43, %cst_73 {dimension_numbers = #tpu.dot_dimension_numbers<[1], [0], [0], [1], [0, 0, 1, 1], [], []>} : vector<8x32xf32>, vector<32x96xf32>, vector<8x96xf32> -> vector<8x96xf32>
    %397 = vector.extract_strided_slice %395 {offsets = [0, 0], sizes = [8, 32], strides = [1, 1]} : vector<8x96xf32> to vector<8x32xf32>
    %398 = vector.extract_strided_slice %396 {offsets = [0, 0], sizes = [8, 32], strides = [1, 1]} : vector<8x96xf32> to vector<8x32xf32>
    %399 = arith.addf %397, %398 : vector<8x32xf32>
    %400 = arith.negf %399 : vector<8x32xf32>
    %401 = math.exp %400 : vector<8x32xf32>
    %cst_74 = arith.constant 1.000000e+00 : f32
    %402 = vector.broadcast %cst_74 : f32 to vector<8x32xf32>
    %403 = arith.addf %402, %401 : vector<8x32xf32>
    %404 = arith.divf %402, %403 : vector<8x32xf32>
    %405 = vector.extract_strided_slice %395 {offsets = [0, 32], sizes = [8, 32], strides = [1, 1]} : vector<8x96xf32> to vector<8x32xf32>
    %406 = vector.extract_strided_slice %396 {offsets = [0, 32], sizes = [8, 32], strides = [1, 1]} : vector<8x96xf32> to vector<8x32xf32>
    %407 = arith.addf %405, %406 : vector<8x32xf32>
    %408 = arith.negf %407 : vector<8x32xf32>
    %409 = math.exp %408 : vector<8x32xf32>
    %cst_75 = arith.constant 1.000000e+00 : f32
    %410 = vector.broadcast %cst_75 : f32 to vector<8x32xf32>
    %411 = arith.addf %410, %409 : vector<8x32xf32>
    %412 = arith.divf %410, %411 : vector<8x32xf32>
    %413 = vector.extract_strided_slice %395 {offsets = [0, 64], sizes = [8, 32], strides = [1, 1]} : vector<8x96xf32> to vector<8x32xf32>
    %414 = vector.extract_strided_slice %396 {offsets = [0, 64], sizes = [8, 32], strides = [1, 1]} : vector<8x96xf32> to vector<8x32xf32>
    %415 = arith.addf %414, %49 : vector<8x32xf32>
    %416 = arith.mulf %404, %415 : vector<8x32xf32>
    %417 = arith.addf %413, %416 : vector<8x32xf32>
    %418 = math.tanh %417 : vector<8x32xf32>
    %cst_76 = arith.constant 1.000000e+00 : f32
    %419 = vector.broadcast %cst_76 : f32 to vector<8x32xf32>
    %420 = arith.subf %419, %412 : vector<8x32xf32>
    %421 = arith.mulf %420, %418 : vector<8x32xf32>
    %422 = arith.mulf %412, %363 : vector<8x32xf32>
    %423 = arith.addf %421, %422 : vector<8x32xf32>
    %424 = arith.select %36, %423, %363 : vector<8x32xi1>, vector<8x32xf32>
    %cst_77 = arith.constant dense<0.000000e+00> : vector<8x96xf32>
    %425 = tpu.matmul %363, %42, %cst_77 {dimension_numbers = #tpu.dot_dimension_numbers<[1], [0], [0], [1], [0, 0, 1, 1], [], []>} : vector<8x32xf32>, vector<32x96xf32>, vector<8x96xf32> -> vector<8x96xf32>
    %426 = arith.addf %425, %54 : vector<8x96xf32>
    %cst_78 = arith.constant dense<0.000000e+00> : vector<8x96xf32>
    %427 = tpu.matmul %394, %44, %cst_78 {dimension_numbers = #tpu.dot_dimension_numbers<[1], [0], [0], [1], [0, 0, 1, 1], [], []>} : vector<8x32xf32>, vector<32x96xf32>, vector<8x96xf32> -> vector<8x96xf32>
    %428 = vector.extract_strided_slice %426 {offsets = [0, 0], sizes = [8, 32], strides = [1, 1]} : vector<8x96xf32> to vector<8x32xf32>
    %429 = vector.extract_strided_slice %427 {offsets = [0, 0], sizes = [8, 32], strides = [1, 1]} : vector<8x96xf32> to vector<8x32xf32>
    %430 = arith.addf %428, %429 : vector<8x32xf32>
    %431 = arith.negf %430 : vector<8x32xf32>
    %432 = math.exp %431 : vector<8x32xf32>
    %cst_79 = arith.constant 1.000000e+00 : f32
    %433 = vector.broadcast %cst_79 : f32 to vector<8x32xf32>
    %434 = arith.addf %433, %432 : vector<8x32xf32>
    %435 = arith.divf %433, %434 : vector<8x32xf32>
    %436 = vector.extract_strided_slice %426 {offsets = [0, 32], sizes = [8, 32], strides = [1, 1]} : vector<8x96xf32> to vector<8x32xf32>
    %437 = vector.extract_strided_slice %427 {offsets = [0, 32], sizes = [8, 32], strides = [1, 1]} : vector<8x96xf32> to vector<8x32xf32>
    %438 = arith.addf %436, %437 : vector<8x32xf32>
    %439 = arith.negf %438 : vector<8x32xf32>
    %440 = math.exp %439 : vector<8x32xf32>
    %cst_80 = arith.constant 1.000000e+00 : f32
    %441 = vector.broadcast %cst_80 : f32 to vector<8x32xf32>
    %442 = arith.addf %441, %440 : vector<8x32xf32>
    %443 = arith.divf %441, %442 : vector<8x32xf32>
    %444 = vector.extract_strided_slice %426 {offsets = [0, 64], sizes = [8, 32], strides = [1, 1]} : vector<8x96xf32> to vector<8x32xf32>
    %445 = vector.extract_strided_slice %427 {offsets = [0, 64], sizes = [8, 32], strides = [1, 1]} : vector<8x96xf32> to vector<8x32xf32>
    %446 = arith.addf %445, %52 : vector<8x32xf32>
    %447 = arith.mulf %435, %446 : vector<8x32xf32>
    %448 = arith.addf %444, %447 : vector<8x32xf32>
    %449 = math.tanh %448 : vector<8x32xf32>
    %cst_81 = arith.constant 1.000000e+00 : f32
    %450 = vector.broadcast %cst_81 : f32 to vector<8x32xf32>
    %451 = arith.subf %450, %443 : vector<8x32xf32>
    %452 = arith.mulf %451, %449 : vector<8x32xf32>
    %453 = arith.mulf %443, %394 : vector<8x32xf32>
    %454 = arith.addf %452, %453 : vector<8x32xf32>
    %455 = arith.select %32, %454, %394 : vector<8x32xi1>, vector<8x32xf32>
    %456 = vector.extract_strided_slice %57 {offsets = [56, 0], sizes = [8, 96], strides = [1, 1]} : vector<64x96xf32> to vector<8x96xf32>
    %cst_82 = arith.constant dense<0.000000e+00> : vector<8x96xf32>
    %457 = tpu.matmul %424, %43, %cst_82 {dimension_numbers = #tpu.dot_dimension_numbers<[1], [0], [0], [1], [0, 0, 1, 1], [], []>} : vector<8x32xf32>, vector<32x96xf32>, vector<8x96xf32> -> vector<8x96xf32>
    %458 = vector.extract_strided_slice %456 {offsets = [0, 0], sizes = [8, 32], strides = [1, 1]} : vector<8x96xf32> to vector<8x32xf32>
    %459 = vector.extract_strided_slice %457 {offsets = [0, 0], sizes = [8, 32], strides = [1, 1]} : vector<8x96xf32> to vector<8x32xf32>
    %460 = arith.addf %458, %459 : vector<8x32xf32>
    %461 = arith.negf %460 : vector<8x32xf32>
    %462 = math.exp %461 : vector<8x32xf32>
    %cst_83 = arith.constant 1.000000e+00 : f32
    %463 = vector.broadcast %cst_83 : f32 to vector<8x32xf32>
    %464 = arith.addf %463, %462 : vector<8x32xf32>
    %465 = arith.divf %463, %464 : vector<8x32xf32>
    %466 = vector.extract_strided_slice %456 {offsets = [0, 32], sizes = [8, 32], strides = [1, 1]} : vector<8x96xf32> to vector<8x32xf32>
    %467 = vector.extract_strided_slice %457 {offsets = [0, 32], sizes = [8, 32], strides = [1, 1]} : vector<8x96xf32> to vector<8x32xf32>
    %468 = arith.addf %466, %467 : vector<8x32xf32>
    %469 = arith.negf %468 : vector<8x32xf32>
    %470 = math.exp %469 : vector<8x32xf32>
    %cst_84 = arith.constant 1.000000e+00 : f32
    %471 = vector.broadcast %cst_84 : f32 to vector<8x32xf32>
    %472 = arith.addf %471, %470 : vector<8x32xf32>
    %473 = arith.divf %471, %472 : vector<8x32xf32>
    %474 = vector.extract_strided_slice %456 {offsets = [0, 64], sizes = [8, 32], strides = [1, 1]} : vector<8x96xf32> to vector<8x32xf32>
    %475 = vector.extract_strided_slice %457 {offsets = [0, 64], sizes = [8, 32], strides = [1, 1]} : vector<8x96xf32> to vector<8x32xf32>
    %476 = arith.addf %475, %49 : vector<8x32xf32>
    %477 = arith.mulf %465, %476 : vector<8x32xf32>
    %478 = arith.addf %474, %477 : vector<8x32xf32>
    %479 = math.tanh %478 : vector<8x32xf32>
    %cst_85 = arith.constant 1.000000e+00 : f32
    %480 = vector.broadcast %cst_85 : f32 to vector<8x32xf32>
    %481 = arith.subf %480, %473 : vector<8x32xf32>
    %482 = arith.mulf %481, %479 : vector<8x32xf32>
    %483 = arith.mulf %473, %424 : vector<8x32xf32>
    %484 = arith.addf %482, %483 : vector<8x32xf32>
    %485 = arith.select %40, %484, %424 : vector<8x32xi1>, vector<8x32xf32>
    %cst_86 = arith.constant dense<0.000000e+00> : vector<8x96xf32>
    %486 = tpu.matmul %424, %42, %cst_86 {dimension_numbers = #tpu.dot_dimension_numbers<[1], [0], [0], [1], [0, 0, 1, 1], [], []>} : vector<8x32xf32>, vector<32x96xf32>, vector<8x96xf32> -> vector<8x96xf32>
    %487 = arith.addf %486, %54 : vector<8x96xf32>
    %cst_87 = arith.constant dense<0.000000e+00> : vector<8x96xf32>
    %488 = tpu.matmul %455, %44, %cst_87 {dimension_numbers = #tpu.dot_dimension_numbers<[1], [0], [0], [1], [0, 0, 1, 1], [], []>} : vector<8x32xf32>, vector<32x96xf32>, vector<8x96xf32> -> vector<8x96xf32>
    %489 = vector.extract_strided_slice %487 {offsets = [0, 0], sizes = [8, 32], strides = [1, 1]} : vector<8x96xf32> to vector<8x32xf32>
    %490 = vector.extract_strided_slice %488 {offsets = [0, 0], sizes = [8, 32], strides = [1, 1]} : vector<8x96xf32> to vector<8x32xf32>
    %491 = arith.addf %489, %490 : vector<8x32xf32>
    %492 = arith.negf %491 : vector<8x32xf32>
    %493 = math.exp %492 : vector<8x32xf32>
    %cst_88 = arith.constant 1.000000e+00 : f32
    %494 = vector.broadcast %cst_88 : f32 to vector<8x32xf32>
    %495 = arith.addf %494, %493 : vector<8x32xf32>
    %496 = arith.divf %494, %495 : vector<8x32xf32>
    %497 = vector.extract_strided_slice %487 {offsets = [0, 32], sizes = [8, 32], strides = [1, 1]} : vector<8x96xf32> to vector<8x32xf32>
    %498 = vector.extract_strided_slice %488 {offsets = [0, 32], sizes = [8, 32], strides = [1, 1]} : vector<8x96xf32> to vector<8x32xf32>
    %499 = arith.addf %497, %498 : vector<8x32xf32>
    %500 = arith.negf %499 : vector<8x32xf32>
    %501 = math.exp %500 : vector<8x32xf32>
    %cst_89 = arith.constant 1.000000e+00 : f32
    %502 = vector.broadcast %cst_89 : f32 to vector<8x32xf32>
    %503 = arith.addf %502, %501 : vector<8x32xf32>
    %504 = arith.divf %502, %503 : vector<8x32xf32>
    %505 = vector.extract_strided_slice %487 {offsets = [0, 64], sizes = [8, 32], strides = [1, 1]} : vector<8x96xf32> to vector<8x32xf32>
    %506 = vector.extract_strided_slice %488 {offsets = [0, 64], sizes = [8, 32], strides = [1, 1]} : vector<8x96xf32> to vector<8x32xf32>
    %507 = arith.addf %506, %52 : vector<8x32xf32>
    %508 = arith.mulf %496, %507 : vector<8x32xf32>
    %509 = arith.addf %505, %508 : vector<8x32xf32>
    %510 = math.tanh %509 : vector<8x32xf32>
    %cst_90 = arith.constant 1.000000e+00 : f32
    %511 = vector.broadcast %cst_90 : f32 to vector<8x32xf32>
    %512 = arith.subf %511, %504 : vector<8x32xf32>
    %513 = arith.mulf %512, %510 : vector<8x32xf32>
    %514 = arith.mulf %504, %455 : vector<8x32xf32>
    %515 = arith.addf %513, %514 : vector<8x32xf32>
    %516 = arith.select %36, %515, %455 : vector<8x32xi1>, vector<8x32xf32>
    %cst_91 = arith.constant dense<0.000000e+00> : vector<8x96xf32>
    %517 = tpu.matmul %485, %42, %cst_91 {dimension_numbers = #tpu.dot_dimension_numbers<[1], [0], [0], [1], [0, 0, 1, 1], [], []>} : vector<8x32xf32>, vector<32x96xf32>, vector<8x96xf32> -> vector<8x96xf32>
    %518 = arith.addf %517, %54 : vector<8x96xf32>
    %cst_92 = arith.constant dense<0.000000e+00> : vector<8x96xf32>
    %519 = tpu.matmul %516, %44, %cst_92 {dimension_numbers = #tpu.dot_dimension_numbers<[1], [0], [0], [1], [0, 0, 1, 1], [], []>} : vector<8x32xf32>, vector<32x96xf32>, vector<8x96xf32> -> vector<8x96xf32>
    %520 = vector.extract_strided_slice %518 {offsets = [0, 0], sizes = [8, 32], strides = [1, 1]} : vector<8x96xf32> to vector<8x32xf32>
    %521 = vector.extract_strided_slice %519 {offsets = [0, 0], sizes = [8, 32], strides = [1, 1]} : vector<8x96xf32> to vector<8x32xf32>
    %522 = arith.addf %520, %521 : vector<8x32xf32>
    %523 = arith.negf %522 : vector<8x32xf32>
    %524 = math.exp %523 : vector<8x32xf32>
    %cst_93 = arith.constant 1.000000e+00 : f32
    %525 = vector.broadcast %cst_93 : f32 to vector<8x32xf32>
    %526 = arith.addf %525, %524 : vector<8x32xf32>
    %527 = arith.divf %525, %526 : vector<8x32xf32>
    %528 = vector.extract_strided_slice %518 {offsets = [0, 32], sizes = [8, 32], strides = [1, 1]} : vector<8x96xf32> to vector<8x32xf32>
    %529 = vector.extract_strided_slice %519 {offsets = [0, 32], sizes = [8, 32], strides = [1, 1]} : vector<8x96xf32> to vector<8x32xf32>
    %530 = arith.addf %528, %529 : vector<8x32xf32>
    %531 = arith.negf %530 : vector<8x32xf32>
    %532 = math.exp %531 : vector<8x32xf32>
    %cst_94 = arith.constant 1.000000e+00 : f32
    %533 = vector.broadcast %cst_94 : f32 to vector<8x32xf32>
    %534 = arith.addf %533, %532 : vector<8x32xf32>
    %535 = arith.divf %533, %534 : vector<8x32xf32>
    %536 = vector.extract_strided_slice %518 {offsets = [0, 64], sizes = [8, 32], strides = [1, 1]} : vector<8x96xf32> to vector<8x32xf32>
    %537 = vector.extract_strided_slice %519 {offsets = [0, 64], sizes = [8, 32], strides = [1, 1]} : vector<8x96xf32> to vector<8x32xf32>
    %538 = arith.addf %537, %52 : vector<8x32xf32>
    %539 = arith.mulf %527, %538 : vector<8x32xf32>
    %540 = arith.addf %536, %539 : vector<8x32xf32>
    %541 = math.tanh %540 : vector<8x32xf32>
    %cst_95 = arith.constant 1.000000e+00 : f32
    %542 = vector.broadcast %cst_95 : f32 to vector<8x32xf32>
    %543 = arith.subf %542, %535 : vector<8x32xf32>
    %544 = arith.mulf %543, %541 : vector<8x32xf32>
    %545 = arith.mulf %535, %516 : vector<8x32xf32>
    %546 = arith.addf %544, %545 : vector<8x32xf32>
    %547 = arith.select %40, %546, %516 : vector<8x32xi1>, vector<8x32xf32>
    %c0_96 = arith.constant 0 : index
    %c0_97 = arith.constant 0 : index
    %548 = vector.load %arg11[%c0_96, %c0_97] : memref<32x128xf32, #tpu.memory_space<vmem>>, vector<32x128xf32>
    %cst_98 = arith.constant dense<0.000000e+00> : vector<8x128xf32>
    %549 = tpu.matmul %547, %548, %cst_98 {dimension_numbers = #tpu.dot_dimension_numbers<[1], [0], [0], [1], [0, 0, 1, 1], [], []>} : vector<8x32xf32>, vector<32x128xf32>, vector<8x128xf32> -> vector<8x128xf32>
    %c0_99 = arith.constant 0 : index
    %c0_100 = arith.constant 0 : index
    %550 = vector.load %arg12[%c0_99, %c0_100] : memref<1x128xf32, #tpu.memory_space<vmem>>, vector<1x128xf32>
    %551 = vector.broadcast %550 : vector<1x128xf32> to vector<8x128xf32>
    %552 = arith.addf %549, %551 : vector<8x128xf32>
    %c0_101 = arith.constant 0 : index
    %c0_102 = arith.constant 0 : index
    %553 = vector.load %arg13[%c0_101, %c0_102] : memref<8x128xf32, #tpu.memory_space<vmem>>, vector<8x128xf32>
    tpu.vector_store %arg13[%c0_101, %c0_102], %552 {strides = array<i32>} : memref<8x128xf32, #tpu.memory_space<vmem>>, vector<8x128xf32>,
    return
  }
}

</mosaic_0001>

<bundles_post_ra>
// kernel: rnn_forward.1
= control target key start
LH: loop header
LB: loop body
LE: loop exit
PB: predicated region body
PF: predicated region fallthrough
CT: control target
= control target key end

     0   :  { %v3574_v0 = vmov 0   ;;  %vm134_vm0 = vcmask 1041408   ;;  %v52_v22 = vlaneseq  ;;  %vm109_vm1 = vcmask 408576   ;;  %s4243_s0 = inlined_call_operand.vmem [shape: s32[64,1], index: 0, kind: input, shape index: {}]   ;;  %s4244_s2 = inlined_call_operand.vmem [shape: f32[50,16], index: 2, kind: input, shape index: {}]   ;;  %s4245_s3 = inlined_call_operand.vmem [shape: f32[16,96], index: 3, kind: input, shape index: {}]   ;;  %s4246_s6 = inlined_call_operand.vmem [shape: f32[1,32], index: 6, kind: input, shape index: {}]   ;;  %s4247_s4 = inlined_call_operand.vmem [shape: f32[32,96], index: 4, kind: input, shape index: {}]   ;;  %s4248_s5 = inlined_call_operand.vmem [shape: f32[1,96], index: 5, kind: input, shape index: {}]   ;;  %s4249_s1 = inlined_call_operand.vmem [shape: s32[8,1], index: 1, kind: input, shape index: {}]   ;;  %s4250_s7 = inlined_call_operand.vmem [shape: f32[32,96], index: 7, kind: input, shape index: {}]   ;;  %s4251_s10 = inlined_call_operand.vmem [shape: f32[1,32], index: 10, kind: input, shape index: {}]   ;;  %s4252_s8 = inlined_call_operand.vmem [shape: f32[32,96], index: 8, kind: input, shape index: {}]   ;;  %s4253_s9 = inlined_call_operand.vmem [shape: f32[1,96], index: 9, kind: input, shape index: {}]   ;;  %s4254_s11 = inlined_call_operand.vmem [shape: f32[32,128], index: 11, kind: input, shape index: {}]   ;;  %s4255_s12 = inlined_call_operand.vmem [shape: f32[1,128], index: 12, kind: input, shape index: {}]   ;;  %s4256_s13 = inlined_call_operand.vmem [shape: f32[8,128], index: 13, kind: output, shape index: {}]  }
   0x1   :  { %3475 = vset.pattern.permute.xlu1 %v3574_v0  ;;  %3474 = vset.pattern.permute.xlu0 %v3574_v0  ;;  %v46_v1 = vld [vmem:[%s4243_s0 + $0x10] sm:$0xff]  ;;  %v44_v2 = vld [vmem:[%s4243_s0] sm:$0xff]  ;;  %v47_v3 = vld [vmem:[%s4243_s0 + $0x18] sm:$0xff]  ;;  %v3575_v26 = vmov 0.0   ;;  %v3576_v41 = vmov 0.0|0.0   ;;  %vm3577_vm10 = vmmov 0  }
   0x2   :  { %61 = vperm.xlu1 %3475, %v46_v1   ;;  %55 = vperm.xlu0 %3474, %v44_v2   ;;  %v45_v4 = vld [vmem:[%s4243_s0 + $0x8] sm:$0xff]  ;;  %v102_v5 = vld [vmem:[%s4244_s2] sm:$0xff]  ;;  %v104_v7 = vld [vmem:[%s4244_s2 + $0x10] sm:$0xff]  ;;  %v53_v23 = vand.u32 127, %v52_v22  ;;  %vm332_vm11 = vcmask 130048   ;;  %vm462_vm14 = vcmask 261120  }
   0x3   :  { %v103_v6 = vld [vmem:[%s4244_s2 + $0x8] sm:$0xff]  ;;  %v105_v8 = vld [vmem:[%s4244_s2 + $0x18] sm:$0xff]  ;;  %v106_v11 = vld [vmem:[%s4244_s2 + $0x20] sm:$0xff] }
   0x4   :  { %v3302_v9 = vpack.c.bf16 %v103_v6, %v102_v5  ;;  %v3306_v10 = vpack.c.bf16 %v105_v8, %v104_v7  ;;  %v107_v12 = vld [vmem:[%s4244_s2 + $0x28] sm:$0xff]  ;;  %v48_v14 = vld [vmem:[%s4243_s0 + $0x20] sm:$0xff]  ;;  %v51_v16 = vld [vmem:[%s4243_s0 + $0x38] sm:$0xff] }
   0x5   :  { %v49_v13 = vld [vmem:[%s4243_s0 + $0x28] sm:$0xff]  ;;  %v3310_v15 = vpack.c.bf16 %v107_v12, %v106_v11  ;;  %v50_v17 = vld [vmem:[%s4243_s0 + $0x30] sm:$0xff]  ;;  %v292_v19 = vld [vmem:[%s4245_s3] sm:$0xff]  ;;  %s3579_s0 = smov 96  }
   0x6   :  { %64 = vperm.xlu1 %3475, %v47_v3   ;;  %58 = vperm.xlu0 %3474, %v45_v4   ;;  %v108_v18 = vld [vmem:[%s4244_s2 + $0x30] sm:$0x3]  ;;  %v293_v20 = vld [vmem:[%s4245_s3 + $0x8] sm:$0xff]  ;;  %v2783_v42 = vld [vmem:[%s4246_s6] ss:$0 sm:$0xff]  ;;  %s3578_s3 = smov 64  }
   0x7   :  { %3303 = vmatprep.subr.bf16.mxu0 %v3302_v9  ;;  %v3314_v21 = vpack.c.bf16 %v293_v20, %v292_v19  ;;  %v298_v43 = vld [vmem:[%s4247_s4] sm:$0xff]  ;;  %v299_v44 = vld [vmem:[%s4247_s4 + $0x8] sm:$0xff]  ;;  %v300_v48 = vld [vmem:[%s4247_s4 + $0x10] sm:$0xff] }
   0x8   :  { %3305 = vmatpush3.bf16.msra.mxu0 %v3302_v9  ;;  %v3733_v46 = vpack.c.bf16 %v299_v44, %v298_v43  ;;  %v301_v49 = vld [vmem:[%s4247_s4 + $0x18] sm:$0xff]  ;;  %v2786_v57 = vld [vmem:[%s4248_s5] ss:$0 sm:$0xff]  ;;  %v303_v44 = vld [vmem:[%s4252_s8 + $0x8] sm:$0xff] }
   0x9   :  { %3307 = vmatprep.subr.bf16.mxu0 %v3306_v10  ;;  %3315 = vmatprep.subr.bf16.mxu1 %v3314_v21  ;;  %v3744_v51 = vpack.c.bf16 %v301_v49, %v300_v48  ;;  %v3786_v11 = vld [vmem:[%s4249_s1] sm:$0xff]  ;;  %v305_v48 = vld [vmem:[%s4252_s8 + $0x18] sm:$0xff] }
   0xa   :  { %70 = vperm.xlu1 %3475, %v49_v13   ;;  %67 = vperm.xlu0 %3474, %v48_v14   ;;  %vm244_vm12 = vcmp.gt.s32.totalorder %v3786_v11, 0  ;;  %v302_v43 = vld [vmem:[%s4252_s8] sm:$0xff]  ;;  %vm250_vm15 = vcmp.gt.s32.totalorder %v3786_v11, 1 }
   0xb   :  { %3317 = vmatpush3.bf16.msra.mxu1 %v3314_v21 }
   0xc   :  { %3309 = vmatpush3.bf16.msra.mxu0 %v3306_v10  ;;  %3318 = vmatprep.subr.bf16.mxu1 %v3576_v41 }
   0xd   :  { %3311 = vmatprep.subr.bf16.mxu0 %v3310_v15 }
   0xe   :  { %76 = vperm.xlu1 %3475, %v51_v16   ;;  %73 = vperm.xlu0 %3474, %v50_v17  }
  0x10   :  { %3313 = vmatpush3.bf16.msra.mxu0 %v3310_v15  ;;  %v245_v15 = vsel %vm244_vm12, 1, %v3574_v0 }
  0x11   :  { %2997 = vmatprep.subr.msk.mxu0 %vm134_vm0, %v108_v18 }
  0x12   :  { %543 = vrot.lane.b32.xlu0 %v2783_v42, %s3578_s3 }
  0x14   :  { %2998 = vmatpush3.msk.msra.mxu0 %vm134_vm0, %v108_v18 }
  0x15   :  { %3330 = vmatprep.subr.bf16.mxu0 %v3576_v41 }
  0x81   :  { %v62_v24 = vpop.permute.xlu1 %61  ;;  %v56_v25 = vpop.permute.xlu0 %55 }
  0x82   :  { %vm78_vm2 = vcmp.eq.s32.totalorder %v56_v25, %v53_v23  ;;  %vm80_vm3 = vcmp.eq.s32.totalorder %v62_v24, %v53_v23 }
  0x83   :  { %v2766_v27 = vsel %vm78_vm2, 1.0, %v3575_v26  ;;  %v2768_v30 = vsel %vm80_vm3, 1.0, %v3575_v26  ;;  %vm262_vm3 = vcmp.gt.s32.totalorder %v3786_v11, 3 }
  0x84   :  { %2999 = vmatprep.mubr.msk.f32.mxu0 %vm109_vm1, %v2766_v27  ;;  %v294_v27 = vld [vmem:[%s4250_s7] sm:$0xff] }
  0x85   :  { %v65_v28 = vpop.permute.xlu1 %64  ;;  %v59_v29 = vpop.permute.xlu0 %58 }
  0x86   :  { %vm79_vm4 = vcmp.eq.s32.totalorder %v59_v29, %v53_v23  ;;  %vm81_vm5 = vcmp.eq.s32.totalorder %v65_v28, %v53_v23  ;;  %v295_v28 = vld [vmem:[%s4250_s7 + $0x8] sm:$0xff]  ;;  %v296_v29 = vld [vmem:[%s4250_s7 + $0x10] sm:$0xff] }
  0x87   :  { %v2767_v31 = vsel %vm79_vm4, 1.0, %v3575_v26  ;;  %v2769_v34 = vsel %vm81_vm5, 1.0, %v3575_v26  ;;  %vm268_vm5 = vcmp.gt.s32.totalorder %v3786_v11, 4 }
  0x88   :  { %3000 = vmatmul.mubr.msk.f32.vlgmr.msra.gmra.mrb[0].mxu0 %vm109_vm1, %v2767_v31  ;;  %v297_v31 = vld [vmem:[%s4250_s7 + $0x18] sm:$0xff] }
  0x89   :  { %v71_v32 = vpop.permute.xlu1 %70  ;;  %3002 = vmatprep.mubr.msk.f32.mxu0 %vm109_vm1, %v2768_v30  ;;  %v68_v33 = vpop.permute.xlu0 %67  ;;  %v3802_v30 = vpack.c.bf16 %v295_v28, %v294_v27 }
  0x8a   :  { %vm82_vm6 = vcmp.eq.s32.totalorder %v68_v33, %v53_v23  ;;  %vm83_vm7 = vcmp.eq.s32.totalorder %v71_v32, %v53_v23  ;;  %v3808_v32 = vpack.c.bf16 %v297_v31, %v296_v29 }
  0x8b   :  { %v2770_v35 = vsel %vm82_vm6, 1.0, %v3575_v26  ;;  %v2771_v38 = vsel %vm83_vm7, 1.0, %v3575_v26  ;;  %3332 = vmatpush3.bf16.msra.mxu0 %v3802_v30  ;;  %vm274_vm7 = vcmp.gt.s32.totalorder %v3786_v11, 5 }
  0x8c   :  { %3003 = vmatmul.mubr.msk.f32.gmra.mrb[2].mxu0 %vm109_vm1, %v2769_v34  ;;  %3333 = vmatprep.subr.bf16.mxu0 %v3576_v41 }
  0x8d   :  { %v77_v36 = vpop.permute.xlu1 %76  ;;  %3005 = vmatprep.mubr.msk.f32.mxu0 %vm109_vm1, %v2770_v35  ;;  %v74_v37 = vpop.permute.xlu0 %73 }
  0x8e   :  { %vm84_vm8 = vcmp.eq.s32.totalorder %v74_v37, %v53_v23  ;;  %vm85_vm9 = vcmp.eq.s32.totalorder %v77_v36, %v53_v23 }
  0x8f   :  { %v2772_v39 = vsel %vm84_vm8, 1.0, %v3575_v26  ;;  %v2773_v40 = vsel %vm85_vm9, 1.0, %v3575_v26  ;;  %3335 = vmatpush3.bf16.msra.mxu0 %v3808_v32  ;;  %vm280_vm9 = vcmp.gt.s32.totalorder %v3786_v11, 6 }
  0x90   :  { %3006 = vmatmul.mubr.msk.f32.gmra.mrb[4].mxu0 %vm109_vm1, %v2771_v38  ;;  %3342 = vmatprep.subr.bf16.mxu0 %v3576_v41 }
  0x91   :  { %3008 = vmatprep.mubr.msk.f32.mxu0 %vm109_vm1, %v2772_v39  ;;  %v3781_v10 = vpop.permute.xlu0 %543  ;;  %v2784_v39 = vld [vmem:[%s4251_s10] ss:$0 sm:$0xff] }
  0x94   :  { %3009 = vmatmul.mubr.msk.f32.gmra.mrb[6].mxu0 %vm109_vm1, %v2773_v40  ;;  %vm256_vm1 = vcmp.gt.s32.totalorder %v3786_v11, 2 }
  0x95   :  { %3057 = vmatprep.mubr.msk.f32.mxu0 %vm3577_vm10, %v3575_v26 }
 0x15b   :  { %v3001_v45 = vpop.f32.mrb[0].mxu0 }
 0x15c   :  { %v204_v47 = vpop.f32.mrb[1].mxu0 }
 0x15d   :  { %3015 = vmatprep.mubr.msk.f32.mxu1 %vm332_vm11, %v204_v47  ;;  %v304_v47 = vld [vmem:[%s4252_s8 + $0x10] sm:$0xff] }
 0x15e   :  { %3016 = vmatmul.mubr.msk.f32.vlgmr.msra.gmra.mrb[0].mxu1 %vm332_vm11, %v3001_v45  ;;  %v3833_v45 = vpack.c.bf16 %v303_v44, %v302_v43 }
 0x15f   :  { %3320 = vmatpush3.bf16.msra.mxu1 %v3733_v46  ;;  %v3004_v50 = vpop.f32.mrb[2].mxu0 }
 0x160   :  { %v214_v52 = vpop.f32.mrb[3].mxu0  ;;  %3321 = vmatprep.subr.bf16.mxu1 %v3576_v41 }
 0x161   :  { %3018 = vmatprep.mubr.msk.f32.mxu1 %vm332_vm11, %v214_v52 }
 0x162   :  { %3019 = vmatmul.mubr.msk.f32.gmra.mrb[2].mxu1 %vm332_vm11, %v3004_v50  ;;  %v3844_v50 = vpack.c.bf16 %v305_v48, %v304_v47 }
 0x163   :  { %v3007_v53 = vpop.f32.mrb[4].mxu0  ;;  %3323 = vmatpush3.bf16.msra.mxu1 %v3744_v51 }
 0x164   :  { %v224_v54 = vpop.f32.mrb[5].mxu0  ;;  %3324 = vmatprep.subr.bf16.mxu1 %v3576_v41 }
 0x165   :  { %3021 = vmatprep.mubr.msk.f32.mxu1 %vm332_vm11, %v224_v54 }
 0x166   :  { %3022 = vmatmul.mubr.msk.f32.gmra.mrb[4].mxu1 %vm332_vm11, %v3007_v53 }
 0x167   :  { %v3010_v55 = vpop.f32.mrb[6].mxu0 }
 0x168   :  { %v234_v56 = vpop.f32.mrb[7].mxu0 }
 0x169   :  { %3024 = vmatprep.mubr.msk.f32.mxu1 %vm332_vm11, %v234_v56 }
 0x16a   :  { %3025 = vmatmul.mubr.msk.f32.gmra.mrb[6].mxu1 %vm332_vm11, %v3010_v55 }
 0x16b   :  { %3035 = vmatprep.mubr.msk.f32.mxu1 %vm3577_vm10, %v3575_v26 }
 0x16e   :  { %3036 = vmatmul.mubr.f32.vlgmr.msra.gmra.mrb[8].mxu1 %v3575_v26 }
 0x16f   :  { %3326 = vmatpush3.bf16.msra.mxu1 %v3733_v46  ;;  %3046 = vmatprep.mubr.msk.f32.mxu1 %vm3577_vm10, %v3575_v26 }
 0x170   :  { %3327 = vmatprep.subr.bf16.mxu1 %v3576_v41 }
 0x173   :  { %3329 = vmatpush3.bf16.msra.mxu1 %v3744_v51 }
 0x174   :  { %3336 = vmatprep.subr.bf16.mxu1 %v3576_v41 }
 0x231   :  { %v3017_v58 = vpop.f32.mrb[0].mxu1 }
 0x232   :  { %v3767_v59 = vadd.f32 %v3017_v58, %v2786_v57  ;;  %v423_v60 = vpop.f32.mrb[1].mxu1 }
 0x233   :  { %v424_v16 = vadd.f32 %v2786_v57, %v423_v60 }
 0x235   :  { %v3020_v61 = vpop.f32.mrb[2].mxu1 }
 0x236   :  { %v3769_v62 = vadd.f32 %v3020_v61, %v2786_v57  ;;  %v433_v63 = vpop.f32.mrb[3].mxu1 }
 0x237   :  { %v3771_v1 = vadd.f32 %v2786_v57, %v433_v63 }
 0x239   :  { %v3023_v2 = vpop.f32.mrb[4].mxu1 }
 0x23a   :  { %v3773_v3 = vadd.f32 %v3023_v2, %v2786_v57  ;;  %v443_v4 = vpop.f32.mrb[5].mxu1  ;;  %v3874_v2 = vld [vmem:[%s4253_s9] ss:$0 sm:$0xff] }
 0x23b   :  { %v3775_v5 = vadd.f32 %v2786_v57, %v443_v4 }
 0x23d   :  { %v3026_v6 = vpop.f32.mrb[6].mxu1 }
 0x23e   :  { %v3777_v7 = vadd.f32 %v3026_v6, %v2786_v57  ;;  %v453_v8 = vpop.f32.mrb[7].mxu1 }
 0x23f   :  { %v3779_v9 = vadd.f32 %v2786_v57, %v453_v8 }
 0x241   :  { %v532_v12 = vpop.f32.mrb[8].mxu1 }
 0x242   :  { %v3037_v13 = vpop.f32.mrb[9].mxu1  ;;  %v546_v14 = vadd.f32 %v3781_v10, %v532_v12  ;;  %v536_v17 = vadd.f32 %v532_v12, %v424_v16 }
 0x244   :  { %548 = vrot.lane.b32.xlu1 %v546_v14, %s3578_s3  ;;  %v2795_v18 = vmul.f32 -1.442695, %v536_v17 }
 0x246   :  { %3476 = vpow2.f32 %v2795_v18 }
 0x248   :  { %247 = vperm.xlu1 %3475, %v245_v15  }
 0x250   :  { %v3477_v19 = vpop.eup %3476 }
 0x251   :  { %v540_v20 = vadd.f32 1.0, %v3477_v19 }
 0x253   :  { %3478 = vrcp.f32 %v540_v20  ;;  %v251_v20 = vsel %vm250_vm15, 1, %v3574_v0 }
 0x25d   :  { %v3479_v21 = vpop.eup %3478 }
 0x25e   :  { %v558_v34 = vsub.f32 1.0, %v3479_v21  ;;  %v564_v37 = vmul.f32 0.0, %v3479_v21 }
 0x2b6   :  { %v549_v22 = vpop.permute.xlu1 %548 }
 0x2b7   :  { %v551_v23 = vmul.f32 %v3479_v21, %v549_v22 }
 0x2b9   :  { %553 = vrot.lane.b32.xlu0 %v551_v23, %s3578_s3 }
 0x2c7   :  { %v3814_v36 = vpop.permute.xlu1 %247 }
 0x2c8   :  { %vm249_vm13 = vcmp.eq.s32.totalorder %v3814_v36, 1 }
 0x32b   :  { %v554_v24 = vpop.permute.xlu0 %553 }
 0x32c   :  { %v556_v25 = vadd.f32 %v554_v24, %v424_v16 }
 0x32e   :  { %3480 = vtanh.f32 %v556_v25 }
 0x338   :  { %v3481_v33 = vpop.eup %3480 }
 0x339   :  { %560 = vrot.lane.b32.xlu0 %v3481_v33, %s3579_s0 }
 0x33d   :  { %817 = vrot.lane.b32.xlu0 %v2784_v39, %s3578_s3 }
 0x3ab   :  { %v561_v35 = vpop.permute.xlu0 %560 }
 0x3ac   :  { %v563_v38 = vmul.f32 %v561_v35, %v558_v34 }
 0x3ae   :  { %v565_v40 = vadd.f32 %v564_v37, %v563_v38 }
 0x3af   :  { %v3866_v57 = vpop.permute.xlu0 %817 }
 0x3b0   :  { %v3823_v42 = vsel %vm249_vm13, %v565_v40, 0.0 }
 0x3b1   :  { %568 = vrot.lane.b32.xlu1 %v3823_v42, %s3579_s0 }
 0x423   :  { %v569_v49 = vpop.permute.xlu1 %568 }
 0x424   :  { %3047 = vmatmul.mubr.msk.f32.vlgmr.msra.gmra.mrb[10].mxu1 %vm462_vm14, %v569_v49  ;;  %3058 = vmatmul.mubr.msk.f32.vlgmr.msra.gmra.mrb[8].mxu0 %vm462_vm14, %v569_v49 }
 0x425   :  { %3338 = vmatpush3.bf16.msra.mxu1 %v3833_v45  ;;  %3068 = vmatprep.mubr.msk.f32.mxu1 %vm3577_vm10, %v3575_v26 }
 0x426   :  { %3339 = vmatprep.subr.bf16.mxu1 %v3576_v41  ;;  %3344 = vmatpush3.bf16.msra.mxu0 %v3733_v46 }
 0x427   :  { %3345 = vmatprep.subr.bf16.mxu0 %v3576_v41  ;;  %3079 = vmatprep.mubr.msk.f32.mxu0 %vm3577_vm10, %v3575_v26 }
 0x429   :  { %3341 = vmatpush3.bf16.msra.mxu1 %v3844_v50 }
 0x42a   :  { %3348 = vmatprep.subr.bf16.mxu1 %v3576_v41  ;;  %3347 = vmatpush3.bf16.msra.mxu0 %v3744_v51 }
 0x42b   :  { %3354 = vmatprep.subr.bf16.mxu0 %v3576_v41 }
 0x42c   :  { %3069 = vmatmul.mubr.f32.vlgmr.msra.gmra.mrb[12].mxu1 %v3575_v26 }
 0x42d   :  { %3350 = vmatpush3.bf16.msra.mxu1 %v3802_v30  ;;  %3090 = vmatprep.mubr.msk.f32.mxu1 %vm3577_vm10, %v3575_v26 }
 0x42e   :  { %3351 = vmatprep.subr.bf16.mxu1 %v3576_v41 }
 0x431   :  { %3353 = vmatpush3.bf16.msra.mxu1 %v3808_v32 }
 0x432   :  { %3360 = vmatprep.subr.bf16.mxu1 %v3576_v41 }
 0x4f7   :  { %v638_v52 = vpop.f32.mrb[10].mxu1  ;;  %v736_v53 = vpop.f32.mrb[8].mxu0 }
 0x4f8   :  { %v649_v54 = vadd.f32 %v638_v52, %v3781_v10  ;;  %v3048_v55 = vpop.f32.mrb[11].mxu1  ;;  %v3059_v56 = vpop.f32.mrb[9].mxu0  ;;  %v642_v63 = vadd.f32 %v638_v52, %v3767_v59  ;;  %v737_v6 = vadd.f32 %v3874_v2, %v736_v53 }
 0x4fa   :  { %651 = vrot.lane.b32.xlu1 %v649_v54, %s3578_s3  ;;  %v2797_v4 = vmul.f32 -1.442695, %v642_v63 }
 0x4fc   :  { %3482 = vpow2.f32 %v2797_v4 }
 0x4ff   :  { %v806_v58 = vpop.f32.mrb[12].mxu1 }
 0x500   :  { %v820_v60 = vadd.f32 %v3866_v57, %v806_v58  ;;  %v3070_v61 = vpop.f32.mrb[13].mxu1  ;;  %v810_v8 = vadd.f32 %v806_v58, %v737_v6 }
 0x502   :  { %822 = vrot.lane.b32.xlu0 %v820_v60, %s3578_s3  ;;  %v2799_v12 = vmul.f32 -1.442695, %v810_v8 }
 0x504   :  { %3484 = vpow2.f32 %v2799_v12 }
 0x506   :  { %v3483_v13 = vpop.eup %3482 }
 0x507   :  { %v646_v14 = vadd.f32 1.0, %v3483_v13 }
 0x509   :  { %3486 = vrcp.f32 %v646_v14 }
 0x50e   :  { %v3485_v15 = vpop.eup %3484 }
 0x50f   :  { %v814_v16 = vadd.f32 1.0, %v3485_v15 }
 0x511   :  { %3488 = vrcp.f32 %v814_v16 }
 0x513   :  { %v3487_v17 = vpop.eup %3486 }
 0x514   :  { %v661_v33 = vsub.f32 1.0, %v3487_v17  ;;  %v667_v37 = vmul.f32 %v3487_v17, %v3823_v42 }
 0x51b   :  { %v3489_v21 = vpop.eup %3488 }
 0x51c   :  { %v832_v40 = vsub.f32 1.0, %v3489_v21  ;;  %v838_v44 = vmul.f32 0.0, %v3489_v21 }
 0x56c   :  { %v652_v18 = vpop.permute.xlu1 %651 }
 0x56d   :  { %v654_v19 = vmul.f32 %v3487_v17, %v652_v18 }
 0x56f   :  { %656 = vrot.lane.b32.xlu1 %v654_v19, %s3578_s3 }
 0x573   :  { %253 = vperm.xlu1 %3475, %v251_v20   ;;  %v257_v20 = vsel %vm256_vm1, 1, %v3574_v0 }
 0x574   :  { %v823_v22 = vpop.permute.xlu0 %822 }
 0x575   :  { %v825_v23 = vmul.f32 %v3489_v21, %v823_v22 }
 0x577   :  { %827 = vrot.lane.b32.xlu0 %v825_v23, %s3578_s3 }
 0x5e1   :  { %v657_v24 = vpop.permute.xlu1 %656 }
 0x5e2   :  { %v659_v25 = vadd.f32 %v657_v24, %v3767_v59 }
 0x5e4   :  { %3490 = vtanh.f32 %v659_v25 }
 0x5e9   :  { %v828_v27 = vpop.permute.xlu0 %827 }
 0x5ea   :  { %v830_v28 = vadd.f32 %v828_v27, %v737_v6 }
 0x5ec   :  { %3492 = vtanh.f32 %v830_v28 }
 0x5ee   :  { %v3491_v29 = vpop.eup %3490 }
 0x5ef   :  { %663 = vrot.lane.b32.xlu0 %v3491_v29, %s3579_s0 }
 0x5f2   :  { %v3884_v35 = vpop.permute.xlu1 %253 }
 0x5f3   :  { %vm255_vm0 = vcmp.eq.s32.totalorder %v3884_v35, 1 }
 0x5f6   :  { %v3493_v31 = vpop.eup %3492 }
 0x5f7   :  { %834 = vrot.lane.b32.xlu1 %v3493_v31, %s3579_s0 }
 0x661   :  { %v664_v34 = vpop.permute.xlu0 %663 }
 0x662   :  { %v666_v38 = vmul.f32 %v664_v34, %v661_v33 }
 0x664   :  { %v668_v39 = vadd.f32 %v667_v37, %v666_v38 }
 0x666   :  { %v3891_v59 = vsel %vm255_vm0, %v668_v39, %v3823_v42 }
 0x667   :  { %842 = vrot.lane.b32.xlu0 %v3891_v59, %s3579_s0 }
 0x669   :  { %v835_v43 = vpop.permute.xlu1 %834 }
 0x66a   :  { %v837_v47 = vmul.f32 %v835_v43, %v832_v40 }
 0x66c   :  { %v839_v48 = vadd.f32 %v838_v44, %v837_v47 }
 0x66e   :  { %v3897_v49 = vsel %vm249_vm13, %v839_v48, 0.0 }
 0x66f   :  { %1015 = vrot.lane.b32.xlu1 %v3897_v49, %s3579_s0 }
 0x6d9   :  { %v843_v52 = vpop.permute.xlu0 %842 }
 0x6da   :  { %3080 = vmatmul.mubr.msk.f32.vlgmr.msra.gmra.mrb[10].mxu0 %vm462_vm14, %v843_v52  ;;  %3091 = vmatmul.mubr.msk.f32.vlgmr.msra.gmra.mrb[14].mxu1 %vm462_vm14, %v843_v52 }
 0x6db   :  { %3356 = vmatpush3.bf16.msra.mxu0 %v3833_v45  ;;  %3101 = vmatprep.mubr.msk.f32.mxu0 %vm3577_vm10, %v3575_v26 }
 0x6dc   :  { %3357 = vmatprep.subr.bf16.mxu0 %v3576_v41  ;;  %3362 = vmatpush3.bf16.msra.mxu1 %v3733_v46 }
 0x6dd   :  { %3363 = vmatprep.subr.bf16.mxu1 %v3576_v41  ;;  %3112 = vmatprep.mubr.msk.f32.mxu1 %vm3577_vm10, %v3575_v26 }
 0x6df   :  { %3359 = vmatpush3.bf16.msra.mxu0 %v3844_v50 }
 0x6e0   :  { %3366 = vmatprep.subr.bf16.mxu0 %v3576_v41  ;;  %3365 = vmatpush3.bf16.msra.mxu1 %v3744_v51 }
 0x6e1   :  { %v1016_v36 = vpop.permute.xlu1 %1015  ;;  %3372 = vmatprep.subr.bf16.mxu1 %v3576_v41 }
 0x6e2   :  { %3102 = vmatmul.mubr.msk.f32.vlgmr.msra.gmra.mrb[12].mxu0 %vm462_vm14, %v1016_v36 }
 0x6e3   :  { %3368 = vmatpush3.bf16.msra.mxu0 %v3802_v30  ;;  %3123 = vmatprep.mubr.msk.f32.mxu0 %vm3577_vm10, %v3575_v26 }
 0x6e4   :  { %3369 = vmatprep.subr.bf16.mxu0 %v3576_v41 }
 0x6e7   :  { %3371 = vmatpush3.bf16.msra.mxu0 %v3808_v32 }
 0x6e8   :  { %3378 = vmatprep.subr.bf16.mxu0 %v3576_v41 }
 0x7ad   :  { %v912_v42 = vpop.f32.mrb[10].mxu0  ;;  %v1010_v53 = vpop.f32.mrb[14].mxu1 }
 0x7ae   :  { %v923_v54 = vadd.f32 %v912_v42, %v3781_v10  ;;  %v3081_v55 = vpop.f32.mrb[11].mxu0  ;;  %v3092_v56 = vpop.f32.mrb[15].mxu1  ;;  %v916_v63 = vadd.f32 %v912_v42, %v3771_v1  ;;  %v1011_v6 = vadd.f32 %v3874_v2, %v1010_v53 }
 0x7b0   :  { %925 = vrot.lane.b32.xlu0 %v923_v54, %s3578_s3  ;;  %v2801_v4 = vmul.f32 -1.442695, %v916_v63 }
 0x7b2   :  { %3494 = vpow2.f32 %v2801_v4 }
 0x7b5   :  { %v1085_v58 = vpop.f32.mrb[12].mxu0 }
 0x7b6   :  { %v1096_v60 = vadd.f32 %v1085_v58, %v3866_v57  ;;  %v3103_v61 = vpop.f32.mrb[13].mxu0  ;;  %v1089_v8 = vadd.f32 %v1085_v58, %v1011_v6 }
 0x7b8   :  { %1098 = vrot.lane.b32.xlu1 %v1096_v60, %s3578_s3  ;;  %v2804_v12 = vmul.f32 -1.442695, %v1089_v8 }
 0x7ba   :  { %3496 = vpow2.f32 %v2804_v12 }
 0x7bc   :  { %v3495_v13 = vpop.eup %3494 }
 0x7bd   :  { %v920_v14 = vadd.f32 1.0, %v3495_v13 }
 0x7bf   :  { %3498 = vrcp.f32 %v920_v14 }
 0x7c4   :  { %v3497_v15 = vpop.eup %3496 }
 0x7c5   :  { %v1093_v16 = vadd.f32 1.0, %v3497_v15 }
 0x7c7   :  { %3500 = vrcp.f32 %v1093_v16 }
 0x7c9   :  { %v3499_v17 = vpop.eup %3498 }
 0x7ca   :  { %v935_v33 = vsub.f32 1.0, %v3499_v17  ;;  %v941_v38 = vmul.f32 %v3499_v17, %v3891_v59 }
 0x7d1   :  { %v3501_v21 = vpop.eup %3500 }
 0x7d2   :  { %v1108_v43 = vsub.f32 1.0, %v3501_v21  ;;  %v1114_v47 = vmul.f32 %v3501_v21, %v3897_v49 }
 0x822   :  { %v926_v18 = vpop.permute.xlu0 %925 }
 0x823   :  { %v928_v19 = vmul.f32 %v3499_v17, %v926_v18 }
 0x825   :  { %930 = vrot.lane.b32.xlu0 %v928_v19, %s3578_s3  ;;  %v263_v19 = vsel %vm262_vm3, 1, %v3574_v0 }
 0x829   :  { %259 = vperm.xlu0 %3474, %v257_v20  }
 0x82a   :  { %v1099_v22 = vpop.permute.xlu1 %1098 }
 0x82b   :  { %v1101_v23 = vmul.f32 %v3501_v21, %v1099_v22 }
 0x82d   :  { %1103 = vrot.lane.b32.xlu1 %v1101_v23, %s3578_s3 }
 0x897   :  { %v931_v24 = vpop.permute.xlu0 %930 }
 0x898   :  { %v933_v25 = vadd.f32 %v931_v24, %v3771_v1 }
 0x89a   :  { %3502 = vtanh.f32 %v933_v25 }
 0x89f   :  { %v1104_v27 = vpop.permute.xlu1 %1103 }
 0x8a0   :  { %v1106_v28 = vadd.f32 %v1104_v27, %v1011_v6 }
 0x8a2   :  { %3504 = vtanh.f32 %v1106_v28 }
 0x8a4   :  { %v3503_v29 = vpop.eup %3502 }
 0x8a5   :  { %937 = vrot.lane.b32.xlu1 %v3503_v29, %s3579_s0 }
 0x8a8   :  { %v3935_v37 = vpop.permute.xlu0 %259 }
 0x8a9   :  { %vm261_vm2 = vcmp.eq.s32.totalorder %v3935_v37, 1 }
 0x8ac   :  { %v3505_v31 = vpop.eup %3504 }
 0x8ad   :  { %1110 = vrot.lane.b32.xlu0 %v3505_v31, %s3579_s0 }
 0x917   :  { %v938_v34 = vpop.permute.xlu1 %937 }
 0x918   :  { %v940_v39 = vmul.f32 %v938_v34, %v935_v33 }
 0x91a   :  { %v942_v40 = vadd.f32 %v941_v38, %v940_v39 }
 0x91c   :  { %v3942_v1 = vsel %vm261_vm2, %v942_v40, %v3891_v59 }
 0x91d   :  { %1118 = vrot.lane.b32.xlu1 %v3942_v1, %s3579_s0 }
 0x91f   :  { %v1111_v44 = vpop.permute.xlu0 %1110 }
 0x920   :  { %v1113_v48 = vmul.f32 %v1111_v44, %v1108_v43 }
 0x922   :  { %v1115_v52 = vadd.f32 %v1114_v47, %v1113_v48 }
 0x924   :  { %v3950_v36 = vsel %vm255_vm0, %v1115_v52, %v3897_v49 }
 0x925   :  { %1291 = vrot.lane.b32.xlu0 %v3950_v36, %s3579_s0 }
 0x98f   :  { %v1119_v42 = vpop.permute.xlu1 %1118 }
 0x990   :  { %3113 = vmatmul.mubr.msk.f32.vlgmr.msra.gmra.mrb[16].mxu1 %vm462_vm14, %v1119_v42  ;;  %3124 = vmatmul.mubr.msk.f32.vlgmr.msra.gmra.mrb[14].mxu0 %vm462_vm14, %v1119_v42 }
 0x991   :  { %3374 = vmatpush3.bf16.msra.mxu1 %v3833_v45  ;;  %3134 = vmatprep.mubr.msk.f32.mxu1 %vm3577_vm10, %v3575_v26 }
 0x992   :  { %3375 = vmatprep.subr.bf16.mxu1 %v3576_v41  ;;  %3380 = vmatpush3.bf16.msra.mxu0 %v3733_v46 }
 0x993   :  { %3381 = vmatprep.subr.bf16.mxu0 %v3576_v41  ;;  %3145 = vmatprep.mubr.msk.f32.mxu0 %vm3577_vm10, %v3575_v26 }
 0x995   :  { %3377 = vmatpush3.bf16.msra.mxu1 %v3844_v50 }
 0x996   :  { %3384 = vmatprep.subr.bf16.mxu1 %v3576_v41  ;;  %3383 = vmatpush3.bf16.msra.mxu0 %v3744_v51 }
 0x997   :  { %v1292_v35 = vpop.permute.xlu0 %1291  ;;  %3390 = vmatprep.subr.bf16.mxu0 %v3576_v41 }
 0x998   :  { %3135 = vmatmul.mubr.msk.f32.vlgmr.msra.gmra.mrb[18].mxu1 %vm462_vm14, %v1292_v35 }
 0x999   :  { %3386 = vmatpush3.bf16.msra.mxu1 %v3802_v30  ;;  %3156 = vmatprep.mubr.msk.f32.mxu1 %vm3577_vm10, %v3575_v26 }
 0x99a   :  { %3387 = vmatprep.subr.bf16.mxu1 %v3576_v41 }
 0x99d   :  { %3389 = vmatpush3.bf16.msra.mxu1 %v3808_v32 }
 0x99e   :  { %3396 = vmatprep.subr.bf16.mxu1 %v3576_v41 }
 0xa63   :  { %v1188_v59 = vpop.f32.mrb[16].mxu1  ;;  %v1286_v49 = vpop.f32.mrb[14].mxu0 }
 0xa64   :  { %v1199_v53 = vadd.f32 %v1188_v59, %v3781_v10  ;;  %v3114_v54 = vpop.f32.mrb[17].mxu1  ;;  %v3125_v55 = vpop.f32.mrb[15].mxu0  ;;  %v1192_v61 = vadd.f32 %v1188_v59, %v3769_v62  ;;  %v1287_v4 = vadd.f32 %v3874_v2, %v1286_v49 }
 0xa66   :  { %1201 = vrot.lane.b32.xlu1 %v1199_v53, %s3578_s3  ;;  %v2806_v63 = vmul.f32 -1.442695, %v1192_v61 }
 0xa68   :  { %3506 = vpow2.f32 %v2806_v63 }
 0xa6b   :  { %v1361_v56 = vpop.f32.mrb[18].mxu1 }
 0xa6c   :  { %v1372_v58 = vadd.f32 %v1361_v56, %v3866_v57  ;;  %v3136_v60 = vpop.f32.mrb[19].mxu1  ;;  %v1365_v6 = vadd.f32 %v1361_v56, %v1287_v4 }
 0xa6e   :  { %1374 = vrot.lane.b32.xlu0 %v1372_v58, %s3578_s3  ;;  %v2809_v8 = vmul.f32 -1.442695, %v1365_v6 }
 0xa70   :  { %3508 = vpow2.f32 %v2809_v8 }
 0xa72   :  { %v3507_v12 = vpop.eup %3506 }
 0xa73   :  { %v1196_v13 = vadd.f32 1.0, %v3507_v12 }
 0xa75   :  { %3510 = vrcp.f32 %v1196_v13 }
 0xa7a   :  { %v3509_v14 = vpop.eup %3508 }
 0xa7b   :  { %v1369_v15 = vadd.f32 1.0, %v3509_v14 }
 0xa7d   :  { %3512 = vrcp.f32 %v1369_v15 }
 0xa7f   :  { %v3511_v16 = vpop.eup %3510 }
 0xa80   :  { %v1211_v31 = vsub.f32 1.0, %v3511_v16  ;;  %v1217_v38 = vmul.f32 %v3511_v16, %v3942_v1 }
 0xa87   :  { %v3513_v20 = vpop.eup %3512 }
 0xa88   :  { %v1384_v43 = vsub.f32 1.0, %v3513_v20  ;;  %v1390_v47 = vmul.f32 %v3513_v20, %v3950_v36 }
 0xad8   :  { %v1202_v17 = vpop.permute.xlu1 %1201 }
 0xad9   :  { %v1204_v18 = vmul.f32 %v3511_v16, %v1202_v17  ;;  %v269_v17 = vsel %vm268_vm5, 1, %v3574_v0 }
 0xadb   :  { %1206 = vrot.lane.b32.xlu1 %v1204_v18, %s3578_s3 }
 0xadf   :  { %265 = vperm.xlu1 %3475, %v263_v19  }
 0xae0   :  { %v1375_v21 = vpop.permute.xlu0 %1374 }
 0xae1   :  { %v1377_v22 = vmul.f32 %v3513_v20, %v1375_v21 }
 0xae3   :  { %1379 = vrot.lane.b32.xlu0 %v1377_v22, %s3578_s3 }
 0xb4d   :  { %v1207_v23 = vpop.permute.xlu1 %1206 }
 0xb4e   :  { %v1209_v24 = vadd.f32 %v1207_v23, %v3769_v62 }
 0xb50   :  { %3514 = vtanh.f32 %v1209_v24 }
 0xb55   :  { %v1380_v25 = vpop.permute.xlu0 %1379 }
 0xb56   :  { %v1382_v27 = vadd.f32 %v1380_v25, %v1287_v4 }
 0xb58   :  { %3516 = vtanh.f32 %v1382_v27 }
 0xb5a   :  { %v3515_v28 = vpop.eup %3514 }
 0xb5b   :  { %1213 = vrot.lane.b32.xlu0 %v3515_v28, %s3579_s0 }
 0xb5e   :  { %v3988_v34 = vpop.permute.xlu1 %265 }
 0xb5f   :  { %vm267_vm4 = vcmp.eq.s32.totalorder %v3988_v34, 1 }
 0xb62   :  { %v3517_v29 = vpop.eup %3516 }
 0xb63   :  { %1386 = vrot.lane.b32.xlu1 %v3517_v29, %s3579_s0 }
 0xbcd   :  { %v1214_v33 = vpop.permute.xlu0 %1213 }
 0xbce   :  { %v1216_v39 = vmul.f32 %v1214_v33, %v1211_v31 }
 0xbd0   :  { %v1218_v40 = vadd.f32 %v1217_v38, %v1216_v39 }
 0xbd2   :  { %v3995_v62 = vsel %vm267_vm4, %v1218_v40, %v3942_v1 }
 0xbd3   :  { %1394 = vrot.lane.b32.xlu0 %v3995_v62, %s3579_s0 }
 0xbd5   :  { %v1387_v44 = vpop.permute.xlu1 %1386 }
 0xbd6   :  { %v1389_v48 = vmul.f32 %v1387_v44, %v1384_v43 }
 0xbd8   :  { %v1391_v52 = vadd.f32 %v1390_v47, %v1389_v48 }
 0xbda   :  { %v4003_v42 = vsel %vm261_vm2, %v1391_v52, %v3950_v36 }
 0xbdb   :  { %1567 = vrot.lane.b32.xlu1 %v4003_v42, %s3579_s0 }
 0xc45   :  { %v1395_v35 = vpop.permute.xlu0 %1394 }
 0xc46   :  { %3146 = vmatmul.mubr.msk.f32.vlgmr.msra.gmra.mrb[16].mxu0 %vm462_vm14, %v1395_v35  ;;  %3157 = vmatmul.mubr.msk.f32.vlgmr.msra.gmra.mrb[20].mxu1 %vm462_vm14, %v1395_v35 }
 0xc47   :  { %3392 = vmatpush3.bf16.msra.mxu0 %v3833_v45  ;;  %3167 = vmatprep.mubr.msk.f32.mxu0 %vm3577_vm10, %v3575_v26 }
 0xc48   :  { %3393 = vmatprep.subr.bf16.mxu0 %v3576_v41  ;;  %3398 = vmatpush3.bf16.msra.mxu1 %v3733_v46 }
 0xc49   :  { %3399 = vmatprep.subr.bf16.mxu1 %v3576_v41  ;;  %3178 = vmatprep.mubr.msk.f32.mxu1 %vm3577_vm10, %v3575_v26 }
 0xc4b   :  { %3395 = vmatpush3.bf16.msra.mxu0 %v3844_v50 }
 0xc4c   :  { %3402 = vmatprep.subr.bf16.mxu0 %v3576_v41  ;;  %3401 = vmatpush3.bf16.msra.mxu1 %v3744_v51 }
 0xc4d   :  { %v1568_v37 = vpop.permute.xlu1 %1567  ;;  %3408 = vmatprep.subr.bf16.mxu1 %v3576_v41 }
 0xc4e   :  { %3168 = vmatmul.mubr.msk.f32.vlgmr.msra.gmra.mrb[18].mxu0 %vm462_vm14, %v1568_v37 }
 0xc4f   :  { %3404 = vmatpush3.bf16.msra.mxu0 %v3802_v30  ;;  %3189 = vmatprep.mubr.msk.f32.mxu0 %vm3577_vm10, %v3575_v26 }
 0xc50   :  { %3405 = vmatprep.subr.bf16.mxu0 %v3576_v41 }
 0xc53   :  { %3407 = vmatpush3.bf16.msra.mxu0 %v3808_v32 }
 0xc54   :  { %3414 = vmatprep.subr.bf16.mxu0 %v3576_v41 }
 0xd19   :  { %v1464_v1 = vpop.f32.mrb[16].mxu0  ;;  %v1562_v36 = vpop.f32.mrb[20].mxu1 }
 0xd1a   :  { %v1475_v59 = vadd.f32 %v1464_v1, %v3781_v10  ;;  %v3147_v49 = vpop.f32.mrb[17].mxu0  ;;  %v3158_v53 = vpop.f32.mrb[21].mxu1  ;;  %v1468_v58 = vadd.f32 %v1464_v1, %v3775_v5  ;;  %v1563_v61 = vadd.f32 %v3874_v2, %v1562_v36 }
 0xd1c   :  { %1477 = vrot.lane.b32.xlu0 %v1475_v59, %s3578_s3  ;;  %v2811_v60 = vmul.f32 -1.442695, %v1468_v58 }
 0xd1e   :  { %3518 = vpow2.f32 %v2811_v60 }
 0xd21   :  { %v1637_v54 = vpop.f32.mrb[18].mxu0 }
 0xd22   :  { %v1648_v55 = vadd.f32 %v1637_v54, %v3866_v57  ;;  %v3169_v56 = vpop.f32.mrb[19].mxu0  ;;  %v1641_v63 = vadd.f32 %v1637_v54, %v1563_v61 }
 0xd24   :  { %1650 = vrot.lane.b32.xlu1 %v1648_v55, %s3578_s3  ;;  %v2814_v4 = vmul.f32 -1.442695, %v1641_v63 }
 0xd26   :  { %3520 = vpow2.f32 %v2814_v4 }
 0xd28   :  { %v3519_v6 = vpop.eup %3518 }
 0xd29   :  { %v1472_v8 = vadd.f32 1.0, %v3519_v6 }
 0xd2b   :  { %3522 = vrcp.f32 %v1472_v8 }
 0xd30   :  { %v3521_v12 = vpop.eup %3520 }
 0xd31   :  { %v1645_v13 = vadd.f32 1.0, %v3521_v12 }
 0xd33   :  { %3524 = vrcp.f32 %v1645_v13 }
 0xd35   :  { %v3523_v14 = vpop.eup %3522 }
 0xd36   :  { %v1487_v28 = vsub.f32 1.0, %v3523_v14  ;;  %v1493_v33 = vmul.f32 %v3523_v14, %v3995_v62 }
 0xd3d   :  { %v3525_v18 = vpop.eup %3524 }
 0xd3e   :  { %v1660_v40 = vsub.f32 1.0, %v3525_v18  ;;  %v1666_v44 = vmul.f32 %v3525_v18, %v4003_v42 }
 0xd8e   :  { %v1478_v15 = vpop.permute.xlu0 %1477 }
 0xd8f   :  { %v1480_v16 = vmul.f32 %v3523_v14, %v1478_v15  ;;  %v275_v14 = vsel %vm274_vm7, 1, %v3574_v0 }
 0xd91   :  { %1482 = vrot.lane.b32.xlu0 %v1480_v16, %s3578_s3 }
 0xd95   :  { %271 = vperm.xlu0 %3474, %v269_v17  }
 0xd96   :  { %v1651_v19 = vpop.permute.xlu1 %1650 }
 0xd97   :  { %v1653_v20 = vmul.f32 %v3525_v18, %v1651_v19 }
 0xd99   :  { %1655 = vrot.lane.b32.xlu1 %v1653_v20, %s3578_s3 }
 0xe03   :  { %v1483_v21 = vpop.permute.xlu0 %1482 }
 0xe04   :  { %v1485_v22 = vadd.f32 %v1483_v21, %v3775_v5 }
 0xe06   :  { %3526 = vtanh.f32 %v1485_v22 }
 0xe0b   :  { %v1656_v23 = vpop.permute.xlu1 %1655 }
 0xe0c   :  { %v1658_v24 = vadd.f32 %v1656_v23, %v1563_v61 }
 0xe0e   :  { %3528 = vtanh.f32 %v1658_v24 }
 0xe10   :  { %v3527_v25 = vpop.eup %3526 }
 0xe11   :  { %1489 = vrot.lane.b32.xlu1 %v3527_v25, %s3579_s0 }
 0xe14   :  { %v4041_v31 = vpop.permute.xlu0 %271 }
 0xe15   :  { %vm273_vm6 = vcmp.eq.s32.totalorder %v4041_v31, 1 }
 0xe18   :  { %v3529_v27 = vpop.eup %3528 }
 0xe19   :  { %1662 = vrot.lane.b32.xlu0 %v3529_v27, %s3579_s0 }
 0xe83   :  { %v1490_v29 = vpop.permute.xlu1 %1489 }
 0xe84   :  { %v1492_v38 = vmul.f32 %v1490_v29, %v1487_v28 }
 0xe86   :  { %v1494_v39 = vadd.f32 %v1493_v33, %v1492_v38 }
 0xe88   :  { %v4048_v5 = vsel %vm273_vm6, %v1494_v39, %v3995_v62 }
 0xe89   :  { %1670 = vrot.lane.b32.xlu1 %v4048_v5, %s3579_s0 }
 0xe8b   :  { %v1663_v43 = vpop.permute.xlu0 %1662 }
 0xe8c   :  { %v1665_v47 = vmul.f32 %v1663_v43, %v1660_v40 }
 0xe8e   :  { %v1667_v48 = vadd.f32 %v1666_v44, %v1665_v47 }
 0xe90   :  { %v4056_v52 = vsel %vm267_vm4, %v1667_v48, %v4003_v42 }
 0xe91   :  { %1843 = vrot.lane.b32.xlu0 %v4056_v52, %s3579_s0 }
 0xefb   :  { %v1671_v35 = vpop.permute.xlu1 %1670 }
 0xefc   :  { %3179 = vmatmul.mubr.msk.f32.vlgmr.msra.gmra.mrb[22].mxu1 %vm462_vm14, %v1671_v35  ;;  %3190 = vmatmul.mubr.msk.f32.vlgmr.msra.gmra.mrb[20].mxu0 %vm462_vm14, %v1671_v35 }
 0xefd   :  { %3410 = vmatpush3.bf16.msra.mxu1 %v3833_v45  ;;  %3200 = vmatprep.mubr.msk.f32.mxu1 %vm3577_vm10, %v3575_v26 }
 0xefe   :  { %3411 = vmatprep.subr.bf16.mxu1 %v3576_v41  ;;  %3416 = vmatpush3.bf16.msra.mxu0 %v3733_v46 }
 0xeff   :  { %3417 = vmatprep.subr.bf16.mxu0 %v3576_v41  ;;  %3211 = vmatprep.mubr.msk.f32.mxu0 %vm3577_vm10, %v3575_v26 }
 0xf01   :  { %3413 = vmatpush3.bf16.msra.mxu1 %v3844_v50 }
 0xf02   :  { %3420 = vmatprep.subr.bf16.mxu1 %v3576_v41  ;;  %3419 = vmatpush3.bf16.msra.mxu0 %v3744_v51 }
 0xf03   :  { %v1844_v34 = vpop.permute.xlu0 %1843  ;;  %3426 = vmatprep.subr.bf16.mxu0 %v3576_v41 }
 0xf04   :  { %3201 = vmatmul.mubr.msk.f32.vlgmr.msra.gmra.mrb[24].mxu1 %vm462_vm14, %v1844_v34 }
 0xf05   :  { %3422 = vmatpush3.bf16.msra.mxu1 %v3802_v30  ;;  %3222 = vmatprep.mubr.msk.f32.mxu1 %vm3577_vm10, %v3575_v26 }
 0xf06   :  { %3423 = vmatprep.subr.bf16.mxu1 %v3576_v41 }
 0xf09   :  { %3425 = vmatpush3.bf16.msra.mxu1 %v3808_v32 }
 0xf0a   :  { %3432 = vmatprep.subr.bf16.mxu1 %v3576_v41 }
 0xfcf   :  { %v1740_v62 = vpop.f32.mrb[22].mxu1  ;;  %v1838_v42 = vpop.f32.mrb[20].mxu0 }
 0xfd0   :  { %v1751_v37 = vadd.f32 %v1740_v62, %v3781_v10  ;;  %v3180_v1 = vpop.f32.mrb[23].mxu1  ;;  %v3191_v36 = vpop.f32.mrb[21].mxu0  ;;  %v1744_v54 = vadd.f32 %v1740_v62, %v3773_v3  ;;  %v1839_v56 = vadd.f32 %v3874_v2, %v1838_v42 }
 0xfd2   :  { %1753 = vrot.lane.b32.xlu1 %v1751_v37, %s3578_s3  ;;  %v2816_v55 = vmul.f32 -1.442695, %v1744_v54 }
 0xfd4   :  { %3530 = vpow2.f32 %v2816_v55 }
 0xfd7   :  { %v1913_v59 = vpop.f32.mrb[24].mxu1 }
 0xfd8   :  { %v1924_v49 = vadd.f32 %v1913_v59, %v3866_v57  ;;  %v3202_v53 = vpop.f32.mrb[25].mxu1  ;;  %v1917_v58 = vadd.f32 %v1913_v59, %v1839_v56 }
 0xfda   :  { %1926 = vrot.lane.b32.xlu0 %v1924_v49, %s3578_s3  ;;  %v2819_v60 = vmul.f32 -1.442695, %v1917_v58 }
 0xfdc   :  { %3532 = vpow2.f32 %v2819_v60 }
 0xfde   :  { %v3531_v61 = vpop.eup %3530 }
 0xfdf   :  { %v1748_v63 = vadd.f32 1.0, %v3531_v61 }
 0xfe1   :  { %3534 = vrcp.f32 %v1748_v63  ;;  %v281_v63 = vsel %vm280_vm9, 1, %v3574_v0 }
 0xfe6   :  { %v3533_v4 = vpop.eup %3532 }
 0xfe7   :  { %v1921_v6 = vadd.f32 1.0, %v3533_v4 }
 0xfe9   :  { %3536 = vrcp.f32 %v1921_v6 }
 0xfeb   :  { %v3535_v8 = vpop.eup %3534 }
 0xfec   :  { %v1763_v24 = vsub.f32 1.0, %v3535_v8  ;;  %v1769_v28 = vmul.f32 %v3535_v8, %v4048_v5 }
 0xff3   :  { %v3537_v15 = vpop.eup %3536 }
 0xff4   :  { %v1936_v38 = vsub.f32 1.0, %v3537_v15  ;;  %v1942_v40 = vmul.f32 %v3537_v15, %v4056_v52 }
0x1044   :  { %v1754_v12 = vpop.permute.xlu1 %1753 }
0x1045   :  { %v1756_v13 = vmul.f32 %v3535_v8, %v1754_v12 }
0x1047   :  { %1758 = vrot.lane.b32.xlu1 %v1756_v13, %s3578_s3 }
0x104b   :  { %277 = vperm.xlu1 %3475, %v275_v14  }
0x104c   :  { %v1927_v16 = vpop.permute.xlu0 %1926 }
0x104d   :  { %v1929_v17 = vmul.f32 %v3537_v15, %v1927_v16 }
0x104f   :  { %1931 = vrot.lane.b32.xlu0 %v1929_v17, %s3578_s3 }
0x10b9   :  { %v1759_v18 = vpop.permute.xlu1 %1758 }
0x10ba   :  { %v1761_v19 = vadd.f32 %v1759_v18, %v3773_v3 }
0x10bc   :  { %3538 = vtanh.f32 %v1761_v19 }
0x10c1   :  { %v1932_v20 = vpop.permute.xlu0 %1931 }
0x10c2   :  { %v1934_v21 = vadd.f32 %v1932_v20, %v1839_v56 }
0x10c4   :  { %3540 = vtanh.f32 %v1934_v21 }
0x10c6   :  { %v3539_v22 = vpop.eup %3538 }
0x10c7   :  { %1765 = vrot.lane.b32.xlu0 %v3539_v22, %s3579_s0 }
0x10ca   :  { %v4094_v27 = vpop.permute.xlu1 %277 }
0x10cb   :  { %vm279_vm8 = vcmp.eq.s32.totalorder %v4094_v27, 1 }
0x10ce   :  { %v3541_v23 = vpop.eup %3540 }
0x10cf   :  { %1938 = vrot.lane.b32.xlu1 %v3541_v23, %s3579_s0 }
0x1139   :  { %v1766_v25 = vpop.permute.xlu0 %1765 }
0x113a   :  { %v1768_v29 = vmul.f32 %v1766_v25, %v1763_v24 }
0x113c   :  { %v1770_v33 = vadd.f32 %v1769_v28, %v1768_v29 }
0x113e   :  { %v4101_v3 = vsel %vm279_vm8, %v1770_v33, %v4048_v5 }
0x113f   :  { %1946 = vrot.lane.b32.xlu0 %v4101_v3, %s3579_s0 }
0x1141   :  { %v1939_v39 = vpop.permute.xlu1 %1938 }
0x1142   :  { %v1941_v43 = vmul.f32 %v1939_v39, %v1936_v38 }
0x1144   :  { %v1943_v44 = vadd.f32 %v1942_v40, %v1941_v43 }
0x1146   :  { %v4109_v47 = vsel %vm273_vm6, %v1943_v44, %v4056_v52 }
0x1147   :  { %2119 = vrot.lane.b32.xlu1 %v4109_v47, %s3579_s0 }
0x11b1   :  { %v1947_v48 = vpop.permute.xlu0 %1946 }
0x11b2   :  { %3212 = vmatmul.mubr.msk.f32.vlgmr.msra.gmra.mrb[22].mxu0 %vm462_vm14, %v1947_v48  ;;  %3223 = vmatmul.mubr.msk.f32.vlgmr.msra.gmra.mrb[26].mxu1 %vm462_vm14, %v1947_v48 }
0x11b3   :  { %3428 = vmatpush3.bf16.msra.mxu0 %v3833_v45  ;;  %3233 = vmatprep.mubr.msk.f32.mxu0 %vm3577_vm10, %v3575_v26 }
0x11b4   :  { %3429 = vmatprep.subr.bf16.mxu0 %v3576_v41  ;;  %3434 = vmatpush3.bf16.msra.mxu1 %v3733_v46 }
0x11b5   :  { %3435 = vmatprep.subr.bf16.mxu1 %v3576_v41  ;;  %3244 = vmatprep.mubr.msk.f32.mxu1 %vm3577_vm10, %v3575_v26 }
0x11b7   :  { %3431 = vmatpush3.bf16.msra.mxu0 %v3844_v50 }
0x11b8   :  { %3438 = vmatprep.subr.bf16.mxu0 %v3576_v41  ;;  %3437 = vmatpush3.bf16.msra.mxu1 %v3744_v51 }
0x11b9   :  { %v2120_v31 = vpop.permute.xlu1 %2119  ;;  %3444 = vmatprep.subr.bf16.mxu1 %v3576_v41 }
0x11ba   :  { %3234 = vmatmul.mubr.msk.f32.vlgmr.msra.gmra.mrb[24].mxu0 %vm462_vm14, %v2120_v31 }
0x11bb   :  { %3440 = vmatpush3.bf16.msra.mxu0 %v3802_v30  ;;  %3255 = vmatprep.mubr.msk.f32.mxu0 %vm3577_vm10, %v3575_v26 }
0x11bc   :  { %3441 = vmatprep.subr.bf16.mxu0 %v3576_v41 }
0x11bf   :  { %3443 = vmatpush3.bf16.msra.mxu0 %v3808_v32 }
0x11c0   :  { %3450 = vmatprep.subr.bf16.mxu0 %v3576_v41 }
0x1285   :  { %v2016_v46 = vpop.f32.mrb[22].mxu0  ;;  %v2114_v5 = vpop.f32.mrb[26].mxu1 }
0x1286   :  { %v2027_v51 = vadd.f32 %v2016_v46, %v3781_v10  ;;  %v3213_v52 = vpop.f32.mrb[23].mxu0  ;;  %v3224_v35 = vpop.f32.mrb[27].mxu1  ;;  %v2020_v37 = vadd.f32 %v2016_v46, %v3779_v9  ;;  %v2115_v36 = vadd.f32 %v3874_v2, %v2114_v5 }
0x1288   :  { %2029 = vrot.lane.b32.xlu0 %v2027_v51, %s3578_s3  ;;  %v2821_v1 = vmul.f32 -1.442695, %v2020_v37 }
0x128a   :  { %3542 = vpow2.f32 %v2821_v1 }
0x128d   :  { %v2189_v34 = vpop.f32.mrb[24].mxu0 }
0x128e   :  { %v2200_v62 = vadd.f32 %v2189_v34, %v3866_v57  ;;  %v3235_v42 = vpop.f32.mrb[25].mxu0  ;;  %v2193_v59 = vadd.f32 %v2189_v34, %v2115_v36 }
0x128f   :  { %v3572_v42 = vld [vmem:[%s4249_s1] sm:$0xff] }
0x1290   :  { %2202 = vrot.lane.b32.xlu1 %v2200_v62, %s3578_s3  ;;  %v2824_v49 = vmul.f32 -1.442695, %v2193_v59  ;;  %vm286_vm12 = vcmp.gt.s32.totalorder %v3572_v42, 7 }
0x1292   :  { %3544 = vpow2.f32 %v2824_v49 }
0x1294   :  { %v3543_v53 = vpop.eup %3542 }
0x1295   :  { %v2024_v54 = vadd.f32 1.0, %v3543_v53 }
0x1297   :  { %3546 = vrcp.f32 %v2024_v54 }
0x129c   :  { %v3545_v55 = vpop.eup %3544 }
0x129d   :  { %v2197_v56 = vadd.f32 1.0, %v3545_v55 }
0x129f   :  { %3548 = vrcp.f32 %v2197_v56 }
0x12a1   :  { %v3547_v58 = vpop.eup %3546 }
0x12a2   :  { %v2039_v17 = vsub.f32 1.0, %v3547_v58  ;;  %v2045_v20 = vmul.f32 %v3547_v58, %v4101_v3 }
0x12a9   :  { %v3549_v4 = vpop.eup %3548 }
0x12aa   :  { %v2212_v23 = vsub.f32 1.0, %v3549_v4  ;;  %v2218_v25 = vmul.f32 %v3549_v4, %v4109_v47 }
0x12fa   :  { %v2030_v60 = vpop.permute.xlu0 %2029 }
0x12fb   :  { %v2032_v61 = vmul.f32 %v3547_v58, %v2030_v60 }
0x12fd   :  { %2034 = vrot.lane.b32.xlu0 %v2032_v61, %s3578_s3 }
0x1301   :  { %283 = vperm.xlu0 %3474, %v281_v63  }
0x1302   :  { %v2203_v6 = vpop.permute.xlu1 %2202 }
0x1303   :  { %v2205_v8 = vmul.f32 %v3549_v4, %v2203_v6 }
0x1305   :  { %2207 = vrot.lane.b32.xlu1 %v2205_v8, %s3578_s3 }
0x136f   :  { %v2035_v12 = vpop.permute.xlu0 %2034 }
0x1370   :  { %v2037_v13 = vadd.f32 %v2035_v12, %v3779_v9 }
0x1372   :  { %3550 = vtanh.f32 %v2037_v13 }
0x1377   :  { %v2208_v14 = vpop.permute.xlu1 %2207 }
0x1378   :  { %v2210_v15 = vadd.f32 %v2208_v14, %v2115_v36 }
0x137a   :  { %3552 = vtanh.f32 %v2210_v15 }
0x137c   :  { %v3551_v16 = vpop.eup %3550 }
0x137d   :  { %2041 = vrot.lane.b32.xlu1 %v3551_v16, %s3579_s0 }
0x1380   :  { %v4147_v19 = vpop.permute.xlu0 %283 }
0x1381   :  { %vm285_vm11 = vcmp.eq.s32.totalorder %v4147_v19, 1 }
0x1384   :  { %v3553_v11 = vpop.eup %3552 }
0x1385   :  { %2214 = vrot.lane.b32.xlu0 %v3553_v11, %s3579_s0 }
0x13ef   :  { %v2042_v18 = vpop.permute.xlu1 %2041 }
0x13f0   :  { %v2044_v21 = vmul.f32 %v2042_v18, %v2039_v17 }
0x13f2   :  { %v2046_v22 = vadd.f32 %v2045_v20, %v2044_v21 }
0x13f4   :  { %v4154_v9 = vsel %vm285_vm11, %v2046_v22, %v4101_v3  ;;  %v3573_v22 = vld [vmem:[%s4253_s9] ss:$0 sm:$0xff] }
0x13f5   :  { %2222 = vrot.lane.b32.xlu1 %v4154_v9, %s3579_s0 }
0x13f7   :  { %v2215_v24 = vpop.permute.xlu0 %2214 }
0x13f8   :  { %v2217_v28 = vmul.f32 %v2215_v24, %v2212_v23 }
0x13fa   :  { %v2219_v29 = vadd.f32 %v2218_v25, %v2217_v28 }
0x13fc   :  { %v4162_v33 = vsel %vm279_vm8, %v2219_v29, %v4109_v47 }
0x13fd   :  { %2395 = vrot.lane.b32.xlu0 %v4162_v33, %s3579_s0 }
0x1467   :  { %v2223_v38 = vpop.permute.xlu1 %2222 }
0x1468   :  { %3245 = vmatmul.mubr.msk.f32.vlgmr.msra.gmra.mrb[28].mxu1 %vm462_vm14, %v2223_v38  ;;  %3256 = vmatmul.mubr.msk.f32.vlgmr.msra.gmra.mrb[26].mxu0 %vm462_vm14, %v2223_v38 }
0x1469   :  { %3446 = vmatpush3.bf16.msra.mxu1 %v3833_v45  ;;  %3266 = vmatprep.mubr.msk.f32.mxu1 %vm3577_vm10, %v3575_v26 }
0x146a   :  { %3447 = vmatprep.subr.bf16.mxu1 %v3576_v41  ;;  %3452 = vmatpush3.bf16.msra.mxu0 %v3802_v30 }
0x146b   :  { %3453 = vmatprep.subr.bf16.mxu0 %v3576_v41  ;;  %3277 = vmatprep.mubr.msk.f32.mxu0 %vm3577_vm10, %v3575_v26 }
0x146d   :  { %3449 = vmatpush3.bf16.msra.mxu1 %v3844_v50 }
0x146e   :  { %3456 = vmatprep.subr.bf16.mxu1 %v3576_v41  ;;  %3455 = vmatpush3.bf16.msra.mxu0 %v3808_v32 }
0x146f   :  { %v2396_v27 = vpop.permute.xlu0 %2395  ;;  %3462 = vmatprep.subr.bf16.mxu0 %v3576_v41 }
0x1470   :  { %3267 = vmatmul.mubr.msk.f32.vlgmr.msra.gmra.mrb[30].mxu1 %vm462_vm14, %v2396_v27  ;;  %v2675_v27 = vld [vmem:[%s4254_s11] sm:$0xff] }
0x1471   :  { %3458 = vmatpush3.bf16.msra.mxu1 %v3833_v45  ;;  %3288 = vmatprep.mubr.msk.f32.mxu1 %vm3577_vm10, %v3575_v26 }
0x1472   :  { %3459 = vmatprep.subr.bf16.mxu1 %v3576_v41 }
0x1475   :  { %3461 = vmatpush3.bf16.msra.mxu1 %v3844_v50 }
0x153b   :  { %v2292_v30 = vpop.f32.mrb[28].mxu1  ;;  %v2390_v3 = vpop.f32.mrb[26].mxu0 }
0x153c   :  { %v2303_v39 = vadd.f32 %v2292_v30, %v3781_v10  ;;  %v3246_v40 = vpop.f32.mrb[29].mxu1  ;;  %v3257_v32 = vpop.f32.mrb[27].mxu0  ;;  %v2296_v45 = vadd.f32 %v2292_v30, %v3777_v7  ;;  %v2391_v31 = vadd.f32 %v3874_v2, %v2390_v3  ;;  %v287_v2 = vsel %vm286_vm12, 1, %v3574_v0  ;;  %v2676_v30 = vld [vmem:[%s4254_s11 + $0x8] sm:$0xff]  ;;  %v2677_v3 = vld [vmem:[%s4254_s11 + $0x10] sm:$0xff] }
0x153d   :  { %v2678_v40 = vld [vmem:[%s4254_s11 + $0x18] sm:$0xff] }
0x153e   :  { %2305 = vrot.lane.b32.xlu0 %v2303_v39, %s3578_s3  ;;  %v2826_v48 = vmul.f32 -1.442695, %v2296_v45  ;;  %v3463_v39 = vpack.c.bf16 %v2676_v30, %v2675_v27  ;;  %v3466_v32 = vpack.c.bf16 %v2678_v40, %v2677_v3 }
0x1540   :  { %3554 = vpow2.f32 %v2826_v48 }
0x1543   :  { %v2465_v43 = vpop.f32.mrb[30].mxu1 }
0x1544   :  { %v2476_v44 = vadd.f32 %v2465_v43, %v3866_v57  ;;  %v3268_v47 = vpop.f32.mrb[31].mxu1  ;;  %v2469_v50 = vadd.f32 %v2465_v43, %v2391_v31 }
0x1546   :  { %2478 = vrot.lane.b32.xlu1 %v2476_v44, %s3578_s3  ;;  %v2829_v46 = vmul.f32 -1.442695, %v2469_v50 }
0x1548   :  { %3556 = vpow2.f32 %v2829_v46 }
0x154a   :  { %v3555_v10 = vpop.eup %3554 }
0x154b   :  { %v2300_v5 = vadd.f32 1.0, %v3555_v10 }
0x154d   :  { %3558 = vrcp.f32 %v2300_v5 }
0x1552   :  { %v3557_v51 = vpop.eup %3556 }
0x1553   :  { %v2473_v52 = vadd.f32 1.0, %v3557_v51 }
0x1555   :  { %3560 = vrcp.f32 %v2473_v52 }
0x1557   :  { %v3559_v35 = vpop.eup %3558 }
0x1558   :  { %v2315_v4 = vsub.f32 1.0, %v3559_v35  ;;  %v2321_v12 = vmul.f32 %v3559_v35, %v4154_v9 }
0x155f   :  { %v3561_v37 = vpop.eup %3560 }
0x1560   :  { %v2488_v0 = vsub.f32 1.0, %v3561_v37  ;;  %v2494_v60 = vmul.f32 %v3561_v37, %v4162_v33 }
0x15b0   :  { %v2306_v34 = vpop.permute.xlu0 %2305 }
0x15b1   :  { %v2308_v62 = vmul.f32 %v3559_v35, %v2306_v34 }
0x15b3   :  { %2310 = vrot.lane.b32.xlu0 %v2308_v62, %s3578_s3 }
0x15b7   :  { %289 = vperm.xlu0 %3474, %v287_v2  }
0x15b8   :  { %v2479_v1 = vpop.permute.xlu1 %2478 }
0x15b9   :  { %v2481_v36 = vmul.f32 %v3561_v37, %v2479_v1 }
0x15bb   :  { %2483 = vrot.lane.b32.xlu1 %v2481_v36, %s3578_s3 }
0x1625   :  { %v2311_v59 = vpop.permute.xlu0 %2310 }
0x1626   :  { %v2313_v54 = vadd.f32 %v2311_v59, %v3777_v7 }
0x162d   :  { %v2484_v49 = vpop.permute.xlu1 %2483 }
0x162e   :  { %v2486_v53 = vadd.f32 %v2484_v49, %v2391_v31 }
0x1630   :  { %3562 = vtanh.f32 %v2486_v53 }
0x1631   :  { %3564 = vtanh.f32 %v2313_v54 }
0x1636   :  { %v290_v8 = vpop.permute.xlu0 %289 }
0x1637   :  { %vm291_vm13 = vcmp.eq.s32.totalorder %v290_v8, 1 }
0x163a   :  { %v3563_v55 = vpop.eup %3562 }
0x163b   :  { %2490 = vrot.lane.b32.xlu1 %v3563_v55, %s3579_s0  ;;  %v3565_v56 = vpop.eup %3564 }
0x163f   :  { %2317 = vrot.lane.b32.xlu1 %v3565_v56, %s3579_s0 }
0x16ad   :  { %v2491_v58 = vpop.permute.xlu1 %2490 }
0x16ae   :  { %v2493_v61 = vmul.f32 %v2491_v58, %v2488_v0 }
0x16b0   :  { %v2495_v63 = vadd.f32 %v2494_v60, %v2493_v61 }
0x16b1   :  { %v2318_v6 = vpop.permute.xlu1 %2317 }
0x16b2   :  { %v2320_v7 = vmul.f32 %v2318_v6, %v2315_v4  ;;  %v2496_v13 = vsel %vm285_vm11, %v2495_v63, %v4162_v33 }
0x16b3   :  { %2573 = vrot.lane.b32.xlu0 %v2496_v13, %s3579_s0 }
0x16b4   :  { %v2322_v14 = vadd.f32 %v2321_v12, %v2320_v7 }
0x16b6   :  { %v2323_v15 = vsel %vm291_vm13, %v2322_v14, %v4154_v9 }
0x16b7   :  { %2498 = vrot.lane.b32.xlu1 %v2323_v15, %s3579_s0 }
0x1725   :  { %v2574_v16 = vpop.permute.xlu0 %2573 }
0x1726   :  { %3289 = vmatmul.mubr.msk.f32.vlgmr.msra.gmra.mrb[32].mxu1 %vm462_vm14, %v2574_v16 }
0x1729   :  { %v2499_v11 = vpop.permute.xlu1 %2498 }
0x172a   :  { %3278 = vmatmul.mubr.msk.f32.vlgmr.msra.gmra.mrb[28].mxu0 %vm462_vm14, %v2499_v11 }
0x172b   :  { %3299 = vmatprep.mubr.msk.f32.mxu0 %vm3577_vm10, %v3575_v26  ;;  %3464 = vmatpush3.bf16.msra.mxu0 %v3463_v39 }
0x172c   :  { %3465 = vmatprep.subr.bf16.mxu0 %v3576_v41  ;;  %v2833_v41 = vld [vmem:[%s4255_s12] ss:$0 sm:$0xff] }
0x172f   :  { %3467 = vmatpush3.bf16.msra.mxu0 %v3466_v32 }
0x17f9   :  { %v2643_v17 = vpop.f32.mrb[32].mxu1 }
0x17fa   :  { %v2654_v18 = vadd.f32 %v2643_v17, %v3866_v57  ;;  %v3290_v19 = vpop.f32.mrb[33].mxu1 }
0x17fc   :  { %2656 = vrot.lane.b32.xlu0 %v2654_v18, %s3578_s3 }
0x17fd   :  { %v2568_v20 = vpop.f32.mrb[28].mxu0 }
0x17fe   :  { %v3279_v21 = vpop.f32.mrb[29].mxu0  ;;  %v2569_v9 = vadd.f32 %v3573_v22, %v2568_v20 }
0x1800   :  { %v2647_v23 = vadd.f32 %v2643_v17, %v2569_v9 }
0x1802   :  { %v2832_v24 = vmul.f32 -1.442695, %v2647_v23 }
0x1804   :  { %3566 = vpow2.f32 %v2832_v24 }
0x180e   :  { %v3567_v25 = vpop.eup %3566 }
0x180f   :  { %v2651_v28 = vadd.f32 1.0, %v3567_v25 }
0x1811   :  { %3568 = vrcp.f32 %v2651_v28 }
0x181b   :  { %v3569_v26 = vpop.eup %3568 }
0x181c   :  { %v2666_v44 = vsub.f32 1.0, %v3569_v26  ;;  %v2672_v45 = vmul.f32 %v3569_v26, %v2496_v13 }
0x186e   :  { %v2657_v29 = vpop.permute.xlu0 %2656 }
0x186f   :  { %v2659_v33 = vmul.f32 %v3569_v26, %v2657_v29 }
0x1871   :  { %2661 = vrot.lane.b32.xlu1 %v2659_v33, %s3578_s3 }
0x18e3   :  { %v2662_v57 = vpop.permute.xlu1 %2661 }
0x18e4   :  { %v2664_v38 = vadd.f32 %v2662_v57, %v2569_v9 }
0x18e6   :  { %3570 = vtanh.f32 %v2664_v38 }
0x18f0   :  { %v3571_v43 = vpop.eup %3570 }
0x18f1   :  { %2668 = vrot.lane.b32.xlu0 %v3571_v43, %s3579_s0 }
0x1963   :  { %v2669_v47 = vpop.permute.xlu0 %2668 }
0x1964   :  { %v2671_v48 = vmul.f32 %v2669_v47, %v2666_v44 }
0x1966   :  { %v2673_v31 = vadd.f32 %v2672_v45, %v2671_v48 }
0x1968   :  { %v2674_v50 = vsel %vm291_vm13, %v2673_v31, %v2496_v13 }
0x1969   :  { %2687 = vrot.lane.b32.xlu1 %v2674_v50, %s3579_s0 }
0x19db   :  { %v2688_v46 = vpop.permute.xlu1 %2687 }
0x19dc   :  { %3300 = vmatmul.mubr.msk.f32.vlgmr.msra.gmra.mrb[30].mxu0 %vm462_vm14, %v2688_v46 }
0x1aaf   :  { %v2757_v10 = vpop.f32.mrb[30].mxu0 }
0x1ab0   :  { %v2758_v5 = vadd.f32 %v2833_v41, %v2757_v10  ;;  %v3301_v51 = vpop.f32.mrb[31].mxu0 }
0x1ab2   :  { %2761 = vst [vmem:[%s4256_s13] sm:$0xff] %v2758_v5 }

</bundles_post_ra>
